<compile_context>
chip_gen: v5e
topology: v5e:2x2
jax: 0.10.0
libtpu: 0.0.40
codegen_flags: <defaults>
</compile_context>

<pallas_src>
import functools
import numpy as np
import jax
import jax.numpy as jnp
from jax.experimental import pallas as pl
from jax.experimental.pallas import tpu as pltpu


def _leaky(x, alpha):
    return jnp.where(x >= 0, x, alpha * x)


def _full(shape):
    nd = len(shape)
    return pl.BlockSpec(shape, lambda i, _n=nd: (0,) * _n)


def _resblock_kernel(ph_ref, w1_ref, b1_ref, w2_ref, b2_ref, *rest,
                     alpha, ho, wo, stride, has_proj):
    """One block of `nb` batch elements per grid step.

    ph_ref : (nb, s*s, size_h, size_w, cin) bf16 — stride-phases of the 1-padded x.
    w1_ref : (9*cin, cout) bf16, w2_ref: (9*cout, cout) bf16 — im2col weights with
             the folded-BN scale already multiplied into the columns.
    b1/b2  : (1, 1, cout) f32 folded-BN bias.
    rest   : [wsc_ref (cin,cout) bf16, bsc_ref,] o_ref, midp_ref (scratch).
    """
    if has_proj:
        wsc_ref, bsc_ref, o_ref, midp_ref = rest
    else:
        o_ref, midp_ref = rest

    nb, _, _, cout = o_ref.shape
    # contract channel axis of (nb*ho, wo, K) with rows of (K, cout)
    dn = (((2,), (0,)), ((), ()))

    def tap(kh, kw):
        # input pixel (i*s + kh, j*s + kw)  ==  phase (kh%s, kw%s) at
        # (i + kh//s, j + kw//s)  -> unit-stride slice only.
        ph = (kh % stride) * stride + (kw % stride)
        return ph_ref[:, ph, pl.ds(kh // stride, ho), pl.ds(kw // stride, wo), :]

    def conv3x3(taps, w_ref):
        # taps: 9 bf16 arrays (nb, ho, wo, c) in (kh, kw) order; w_ref: (9c, cout).
        c = taps[0].shape[-1]
        if c < 128:
            # small C: one big-K matmul keeps the MXU fed
            x9 = jnp.concatenate(taps, axis=-1).reshape(nb * ho, wo, 9 * c)
            return jax.lax.dot_general(x9, w_ref[...], dn,
                                       preferred_element_type=jnp.float32)
        # large C: accumulate 3 matmuls of K=3C -> 3x smaller VMEM temporaries
        acc = None
        for kh in range(3):
            row = jnp.concatenate(taps[3 * kh:3 * kh + 3],
                                  axis=-1).reshape(nb * ho, wo, 3 * c)
            wrow = w_ref[pl.ds(3 * kh * c, 3 * c), :]
            p = jax.lax.dot_general(row, wrow, dn,
                                    preferred_element_type=jnp.float32)
            acc = p if acc is None else acc + p
        return acc

    # ---- conv1: 3x3 stride-s conv (scale folded) + bias + LeakyReLU ----
    taps1 = [tap(kh, kw).astype(jnp.bfloat16)
             for kh in range(3) for kw in range(3)]
    mid = _leaky(conv3x3(taps1, w1_ref) + b1_ref[...], alpha)   # (nb*ho, wo, cout) f32

    # ---- stage mid with a 1-px zero ring for conv2 (padding=1). The zero
    #      columns are merged into the full-width interior store; only the
    #      top/bottom rows need dedicated stores. Every row is overwritten
    #      each step (megacore-safe). ----
    zrow = jnp.zeros((nb, 1, wo + 2, cout), midp_ref.dtype)
    midp_ref[:, pl.ds(0, 1), :, :] = zrow
    midp_ref[:, pl.ds(ho + 1, 1), :, :] = zrow
    zcol = jnp.zeros((nb, ho, 1, cout), midp_ref.dtype)
    midp_ref[:, pl.ds(1, ho), :, :] = jnp.concatenate(
        [zcol, mid.reshape(nb, ho, wo, cout), zcol], axis=2)

    # ---- conv2: 3x3 stride-1 conv (scale folded) + bias ----
    taps2 = [midp_ref[:, pl.ds(kh, ho), pl.ds(kw, wo), :].astype(jnp.bfloat16)
             for kh in range(3) for kw in range(3)]
    left = conv3x3(taps2, w2_ref) + b2_ref[...]                 # (nb*ho, wo, cout) f32

    # ---- shortcut: the center tap IS x[::stride, ::stride] ----
    x_sc = tap(1, 1)                                            # (nb, ho, wo, cin) bf16
    if has_proj:                                   # 1x1 conv (scale folded) + bias
        cin = x_sc.shape[-1]
        sc = jax.lax.dot_general(x_sc.reshape(nb * ho, wo, cin), wsc_ref[...],
                                 dn, preferred_element_type=jnp.float32)
        sc = sc + bsc_ref[...]
    else:                                          # identity: no matmul at all
        sc = x_sc.reshape(nb * ho, wo, cout).astype(jnp.float32)

    out = _leaky(left + sc, alpha)
    o_ref[...] = out.reshape(nb, ho, wo, cout).astype(o_ref.dtype)


def residual_block_pallas(x_nhwc, params, *, stride=1, alpha=0.01, n_block=8):
    n, h, w, cin = x_nhwc.shape
    cout = params["w1"].shape[-1]
    s = stride
    assert 1 <= s <= 3, "3x3 stride-phase decomposition assumes stride <= 3"
    ho = (h - 1) // s + 1
    wo = (w - 1) // s + 1

    # Rows/cols per stride-phase. The `(2 // s)` extra rows/cols cover the
    # in-kernel kh//s, kw//s tap offsets (0 or 1) for a 3x3 kernel with 1-px pad.
    size_h = ho + (2 // s)
    size_w = wo + (2 // s)
    hn, wn = s * size_h, s * size_w

    # Glue: 1-px zero pad (conv1 padding) and split into s x s stride-phases so
    # every in-kernel tap read is a unit-stride slice. bf16 storage halves the
    # dominant input HBM stream; accumulation stays f32 in-kernel.
    xp = jnp.pad(x_nhwc, ((0, 0), (1, 1), (1, 1), (0, 0)))
    xp = jnp.pad(xp, ((0, 0), (0, max(0, hn - (h + 2))),
                      (0, max(0, wn - (w + 2))), (0, 0)))
    xp = xp[:, :hn, :wn, :]
    phases = xp.reshape(n, size_h, s, size_w, s, cin)
    phases = (phases.transpose(0, 2, 4, 1, 3, 5)
              .reshape(n, s * s, size_h, size_w, cin).astype(jnp.bfloat16))

    # Batch blocking: several images per step -> larger matmul M, fewer grid
    # steps; keep >= 2 grid steps whenever n > 1 so both v7x TCs stay busy.
    nb = max(1, min(n_block, n))
    if n > 1 and pl.cdiv(n, nb) < 2:
        nb = pl.cdiv(n, 2)
    n_pad = pl.cdiv(n, nb) * nb
    if n_pad != n:
        phases = jnp.pad(phases, ((0, n_pad - n),) + ((0, 0),) * 4)
    grid_n = n_pad // nb

    # im2col weights with the folded-BN scale multiplied into the output
    # columns, pre-cast to bf16 (only the bias add remains in-kernel).
    w1 = (params["w1"] * params["s1"].reshape(1, 1, 1, cout)
          ).reshape(9 * cin, cout).astype(jnp.bfloat16)
    w2 = (params["w2"] * params["s2"].reshape(1, 1, 1, cout)
          ).reshape(9 * cout, cout).astype(jnp.bfloat16)

    has_proj = params["wsc"] is not None
    extra_inputs, extra_specs = [], []
    if has_proj:
        wsc = (params["wsc"] * params["ssc"].reshape(1, 1, 1, cout)
               ).reshape(cin, cout).astype(jnp.bfloat16)
        extra_inputs = [wsc, params["bsc"]]
        extra_specs = [_full((cin, cout)), _full((1, 1, cout))]

    # Generation-aware VMEM limit (v5e/v6e: 128 MiB physical; v7x: 64 MiB).
    try:
        vmem_cap = int(getattr(pltpu.get_tpu_info(), "vmem_capacity_bytes",
                               64 * 1024 * 1024))
    except Exception:
        vmem_cap = 64 * 1024 * 1024
    vmem_limit = int(min(max(vmem_cap - 16 * 1024 * 1024, 32 * 1024 * 1024),
                         96 * 1024 * 1024))

    kern = functools.partial(_resblock_kernel, alpha=alpha, ho=ho, wo=wo,
                             stride=s, has_proj=has_proj)

    out = pl.pallas_call(
        kern,
        out_shape=jax.ShapeDtypeStruct((n_pad, ho, wo, cout), jnp.float32),
        grid=(grid_n,),
        in_specs=[
            pl.BlockSpec((nb, s * s, size_h, size_w, cin),
                         lambda i: (i, 0, 0, 0, 0)),      # stride-phases of padded x
            _full((9 * cin, cout)),                       # w1 (im2col, scale folded)
            _full((1, 1, cout)),                          # bn1 bias
            _full((9 * cout, cout)),                      # w2 (im2col, scale folded)
            _full((1, 1, cout)),                          # bn2 bias
        ] + extra_specs,
        out_specs=pl.BlockSpec((nb, ho, wo, cout), lambda i: (i, 0, 0, 0)),
        scratch_shapes=[pltpu.VMEM((nb, ho + 2, wo + 2, cout), jnp.float32)],
        compiler_params=pltpu.CompilerParams(
            dimension_semantics=("parallel",),
            vmem_limit_bytes=vmem_limit),
    )(phases, w1, params["b1"], w2, params["b2"], *extra_inputs)

    return out[:n] if n_pad != n else out


# ---------------- deterministic params + plain-JAX reference ----------------

def make_params(key, cin, cout, stride):
    ks = jax.random.split(key, 12)
    eps = 1e-5

    def bn_fold(kg, kb, km, kv, c):
        gamma = 1.0 + 0.1 * jax.random.normal(kg, (c,), jnp.float32)
        beta = 0.1 * jax.random.normal(kb, (c,), jnp.float32)
        mean = 0.1 * jax.random.normal(km, (c,), jnp.float32)
        var = 0.5 + jax.random.uniform(kv, (c,), jnp.float32)
        scale = gamma / jnp.sqrt(var + eps)
        bias = beta - mean * scale
        return scale.reshape(1, 1, c), bias.reshape(1, 1, c)

    w1 = 0.1 * jax.random.normal(ks[0], (3, 3, cin, cout), jnp.float32)
    s1, b1 = bn_fold(ks[1], ks[2], ks[3], ks[4], cout)
    w2 = 0.1 * jax.random.normal(ks[5], (3, 3, cout, cout), jnp.float32)
    s2, b2 = bn_fold(ks[6], ks[7], ks[8], ks[9], cout)
    params = dict(w1=w1, s1=s1, b1=b1, w2=w2, s2=s2, b2=b2,
                  wsc=None, ssc=None, bsc=None)
    if stride != 1 or cin != cout:
        wsc = 0.1 * jax.random.normal(ks[10], (1, 1, cin, cout), jnp.float32)
        kk = jax.random.split(ks[11], 4)
        ssc, bsc = bn_fold(kk[0], kk[1], kk[2], kk[3], cout)
        params.update(wsc=wsc, ssc=ssc, bsc=bsc)
    return params


def residual_block_ref(x_nhwc, params, *, stride=1, alpha=0.01):
    def conv(x, w, s, pad):
        return jax.lax.conv_general_dilated(
            x, w, (s, s), [(pad, pad), (pad, pad)],
            dimension_numbers=("NHWC", "HWIO", "NHWC"))

    y = conv(x_nhwc, params["w1"], stride, 1) * params["s1"] + params["b1"]
    y = _leaky(y, alpha)
    y = conv(y, params["w2"], 1, 1) * params["s2"] + params["b2"]
    if params["wsc"] is None:
        sc = x_nhwc[:, ::stride, ::stride, :]
    else:
        sc = conv(x_nhwc, params["wsc"], stride, 0) * params["ssc"] + params["bsc"]
    return _leaky(y + sc, alpha)


if __name__ == "__main__":
    key = jax.random.PRNGKey(0)
    kx, kx3, kp1, kp2 = jax.random.split(key, 4)

    # bf16 operand storage (weights AND activations) -> ~1e-2 relative accuracy;
    # f32 accumulation in-kernel. Tolerances reflect that (inference-grade).
    RTOL, ATOL = 2e-2, 3e-2

    # Case 1: projection shortcut (stride=2, 4 -> 8 channels)
    N, Cin, Cout, H, W, stride, alpha = 2, 4, 8, 16, 16, 2, 0.01
    x_nchw = jax.random.normal(kx, (N, Cin, H, W), jnp.float32)   # PyTorch NCHW input
    x_nhwc = jnp.transpose(x_nchw, (0, 2, 3, 1))
    params = make_params(kp1, Cin, Cout, stride)
    out = jax.block_until_ready(
        residual_block_pallas(x_nhwc, params, stride=stride, alpha=alpha))
    ref = residual_block_ref(x_nhwc, params, stride=stride, alpha=alpha)
    assert out.shape == (N, H // stride, W // stride, Cout)
    if not np.allclose(np.asarray(out), np.asarray(ref), rtol=RTOL, atol=ATOL):
        raise AssertionError("Pallas output mismatch vs JAX reference (projection path)")

    # Case 2: identity shortcut (stride=1, 4 -> 4 channels)
    params_id = make_params(kp2, Cin, Cin, 1)
    out2 = jax.block_until_ready(
        residual_block_pallas(x_nhwc, params_id, stride=1, alpha=alpha))
    ref2 = residual_block_ref(x_nhwc, params_id, stride=1, alpha=alpha)
    if not np.allclose(np.asarray(out2), np.asarray(ref2), rtol=RTOL, atol=ATOL):
        raise AssertionError("Pallas output mismatch vs JAX reference (identity path)")

    # Case 3: identity shortcut, n=5 -> exercises batch blocking + batch padding
    x3 = jnp.transpose(jax.random.normal(kx3, (5, Cin, H, W), jnp.float32),
                       (0, 2, 3, 1))
    out3 = jax.block_until_ready(
        residual_block_pallas(x3, params_id, stride=1, alpha=alpha))
    ref3 = residual_block_ref(x3, params_id, stride=1, alpha=alpha)
    assert out3.shape == ref3.shape
    if not np.allclose(np.asarray(out3), np.asarray(ref3), rtol=RTOL, atol=ATOL):
        raise AssertionError("Pallas output mismatch vs JAX reference (batch-padding path)")

    print("KERNEL_OK")
</pallas_src>

<mosaic_0001>
module attributes {stable_mosaic.version = 11 : i64} {
  func.func @_resblock_kernel(%arg0: i32, %arg1: memref<1x4x9x9x4xbf16, #tpu.memory_space<vmem>>, %arg2: memref<36x8xbf16, #tpu.memory_space<vmem>>, %arg3: memref<1x1x8xf32, #tpu.memory_space<vmem>>, %arg4: memref<72x8xbf16, #tpu.memory_space<vmem>>, %arg5: memref<1x1x8xf32, #tpu.memory_space<vmem>>, %arg6: memref<4x8xbf16, #tpu.memory_space<vmem>>, %arg7: memref<1x1x8xf32, #tpu.memory_space<vmem>>, %arg8: memref<1x8x8x8xf32, #tpu.memory_space<vmem>>, %arg9: memref<1x10x10x8xf32, #tpu.memory_space<vmem>>) attributes {dimension_semantics = [#tpu.dimension_semantics<parallel>], iteration_bounds = array<i64: 2>, scalar_prefetch = 0 : i64, scratch_operands = 1 : i64, tpu.core_type = #tpu.core_type<tc>, window_params = [{transform_indices = @transform_0, window_bounds = array<i64: 1, 4, 9, 9, 4>}, {pipeline_mode = #tpu.pipeline_mode<synchronous>, transform_indices = @transform_1, window_bounds = array<i64: 36, 8>}, {pipeline_mode = #tpu.pipeline_mode<synchronous>, transform_indices = @transform_2, window_bounds = array<i64: 1, 1, 8>}, {pipeline_mode = #tpu.pipeline_mode<synchronous>, transform_indices = @transform_3, window_bounds = array<i64: 72, 8>}, {pipeline_mode = #tpu.pipeline_mode<synchronous>, transform_indices = @transform_4, window_bounds = array<i64: 1, 1, 8>}, {pipeline_mode = #tpu.pipeline_mode<synchronous>, transform_indices = @transform_5, window_bounds = array<i64: 4, 8>}, {pipeline_mode = #tpu.pipeline_mode<synchronous>, transform_indices = @transform_6, window_bounds = array<i64: 1, 1, 8>}, {transform_indices = @transform_7, window_bounds = array<i64: 1, 8, 8, 8>}]} {
    %c0 = arith.constant 0 : index
    %c0_0 = arith.constant 0 : index
    %c0_1 = arith.constant 0 : index
    %c0_2 = arith.constant 0 : index
    %c0_3 = arith.constant 0 : index
    %0 = vector.load %arg1[%c0, %c0_0, %c0_1, %c0_2, %c0_3] : memref<1x4x9x9x4xbf16, #tpu.memory_space<vmem>>, vector<1x1x8x8x4xbf16>
    %1 = vector.shape_cast %0 : vector<1x1x8x8x4xbf16> to vector<1x8x8x4xbf16>
    %c0_4 = arith.constant 0 : index
    %c1 = arith.constant 1 : index
    %c0_5 = arith.constant 0 : index
    %c0_6 = arith.constant 0 : index
    %c0_7 = arith.constant 0 : index
    %2 = vector.load %arg1[%c0_4, %c1, %c0_5, %c0_6, %c0_7] : memref<1x4x9x9x4xbf16, #tpu.memory_space<vmem>>, vector<1x1x8x8x4xbf16>
    %3 = vector.shape_cast %2 : vector<1x1x8x8x4xbf16> to vector<1x8x8x4xbf16>
    %c0_8 = arith.constant 0 : index
    %c0_9 = arith.constant 0 : index
    %c0_10 = arith.constant 0 : index
    %c1_11 = arith.constant 1 : index
    %c0_12 = arith.constant 0 : index
    %4 = vector.load %arg1[%c0_8, %c0_9, %c0_10, %c1_11, %c0_12] : memref<1x4x9x9x4xbf16, #tpu.memory_space<vmem>>, vector<1x1x8x8x4xbf16>
    %5 = vector.shape_cast %4 : vector<1x1x8x8x4xbf16> to vector<1x8x8x4xbf16>
    %c0_13 = arith.constant 0 : index
    %c2 = arith.constant 2 : index
    %c0_14 = arith.constant 0 : index
    %c0_15 = arith.constant 0 : index
    %c0_16 = arith.constant 0 : index
    %6 = vector.load %arg1[%c0_13, %c2, %c0_14, %c0_15, %c0_16] : memref<1x4x9x9x4xbf16, #tpu.memory_space<vmem>>, vector<1x1x8x8x4xbf16>
    %7 = vector.shape_cast %6 : vector<1x1x8x8x4xbf16> to vector<1x8x8x4xbf16>
    %c0_17 = arith.constant 0 : index
    %c3 = arith.constant 3 : index
    %c0_18 = arith.constant 0 : index
    %c0_19 = arith.constant 0 : index
    %c0_20 = arith.constant 0 : index
    %8 = vector.load %arg1[%c0_17, %c3, %c0_18, %c0_19, %c0_20] : memref<1x4x9x9x4xbf16, #tpu.memory_space<vmem>>, vector<1x1x8x8x4xbf16>
    %9 = vector.shape_cast %8 : vector<1x1x8x8x4xbf16> to vector<1x8x8x4xbf16>
    %c0_21 = arith.constant 0 : index
    %c2_22 = arith.constant 2 : index
    %c0_23 = arith.constant 0 : index
    %c1_24 = arith.constant 1 : index
    %c0_25 = arith.constant 0 : index
    %10 = vector.load %arg1[%c0_21, %c2_22, %c0_23, %c1_24, %c0_25] : memref<1x4x9x9x4xbf16, #tpu.memory_space<vmem>>, vector<1x1x8x8x4xbf16>
    %11 = vector.shape_cast %10 : vector<1x1x8x8x4xbf16> to vector<1x8x8x4xbf16>
    %c0_26 = arith.constant 0 : index
    %c0_27 = arith.constant 0 : index
    %c1_28 = arith.constant 1 : index
    %c0_29 = arith.constant 0 : index
    %c0_30 = arith.constant 0 : index
    %12 = vector.load %arg1[%c0_26, %c0_27, %c1_28, %c0_29, %c0_30] : memref<1x4x9x9x4xbf16, #tpu.memory_space<vmem>>, vector<1x1x8x8x4xbf16>
    %13 = vector.shape_cast %12 : vector<1x1x8x8x4xbf16> to vector<1x8x8x4xbf16>
    %c0_31 = arith.constant 0 : index
    %c1_32 = arith.constant 1 : index
    %c1_33 = arith.constant 1 : index
    %c0_34 = arith.constant 0 : index
    %c0_35 = arith.constant 0 : index
    %14 = vector.load %arg1[%c0_31, %c1_32, %c1_33, %c0_34, %c0_35] : memref<1x4x9x9x4xbf16, #tpu.memory_space<vmem>>, vector<1x1x8x8x4xbf16>
    %15 = vector.shape_cast %14 : vector<1x1x8x8x4xbf16> to vector<1x8x8x4xbf16>
    %c0_36 = arith.constant 0 : index
    %c0_37 = arith.constant 0 : index
    %c1_38 = arith.constant 1 : index
    %c1_39 = arith.constant 1 : index
    %c0_40 = arith.constant 0 : index
    %16 = vector.load %arg1[%c0_36, %c0_37, %c1_38, %c1_39, %c0_40] : memref<1x4x9x9x4xbf16, #tpu.memory_space<vmem>>, vector<1x1x8x8x4xbf16>
    %17 = vector.shape_cast %16 : vector<1x1x8x8x4xbf16> to vector<1x8x8x4xbf16>
    %18 = tpu.concatenate %1, %3, %5, %7, %9, %11, %13, %15, %17 in 3 : vector<1x8x8x4xbf16>, vector<1x8x8x4xbf16>, vector<1x8x8x4xbf16>, vector<1x8x8x4xbf16>, vector<1x8x8x4xbf16>, vector<1x8x8x4xbf16>, vector<1x8x8x4xbf16>, vector<1x8x8x4xbf16>, vector<1x8x8x4xbf16> -> vector<1x8x8x36xbf16>
    %19 = vector.shape_cast %18 : vector<1x8x8x36xbf16> to vector<8x8x36xbf16>
    %c0_41 = arith.constant 0 : index
    %c0_42 = arith.constant 0 : index
    %20 = vector.load %arg2[%c0_41, %c0_42] : memref<36x8xbf16, #tpu.memory_space<vmem>>, vector<36x8xbf16>
    %cst = arith.constant dense<0.000000e+00> : vector<8x8x8xf32>
    %21 = tpu.matmul %19, %20, %cst {dimension_numbers = #tpu.dot_dimension_numbers<[2], [0], [0, 1], [1], [0, 0, 0, 1, 1, 1], [], []>} : vector<8x8x36xbf16>, vector<36x8xbf16>, vector<8x8x8xf32> -> vector<8x8x8xf32>
    %c0_43 = arith.constant 0 : index
    %c0_44 = arith.constant 0 : index
    %c0_45 = arith.constant 0 : index
    %22 = vector.load %arg3[%c0_43, %c0_44, %c0_45] : memref<1x1x8xf32, #tpu.memory_space<vmem>>, vector<1x1x8xf32>
    %23 = vector.broadcast %22 : vector<1x1x8xf32> to vector<8x8x8xf32>
    %24 = arith.addf %21, %23 : vector<8x8x8xf32>
    %cst_46 = arith.constant 0.000000e+00 : f32
    %25 = vector.broadcast %cst_46 : f32 to vector<8x8x8xf32>
    %26 = arith.cmpf oge, %24, %25 : vector<8x8x8xf32>
    %cst_47 = arith.constant 0.00999999977 : f32
    %27 = vector.broadcast %cst_47 : f32 to vector<8x8x8xf32>
    %28 = arith.mulf %27, %24 : vector<8x8x8xf32>
    %29 = arith.select %26, %24, %28 : vector<8x8x8xi1>, vector<8x8x8xf32>
    %cst_48 = arith.constant 0.000000e+00 : f32
    %30 = vector.broadcast %cst_48 : f32 to vector<1x1x10x8xf32>
    %c0_49 = arith.constant 0 : index
    %c0_50 = arith.constant 0 : index
    %c0_51 = arith.constant 0 : index
    %c0_52 = arith.constant 0 : index
    %31 = vector.load %arg9[%c0_49, %c0_50, %c0_51, %c0_52] : memref<1x10x10x8xf32, #tpu.memory_space<vmem>>, vector<1x1x10x8xf32>
    tpu.vector_store %arg9[%c0_49, %c0_50, %c0_51, %c0_52], %30 {strides = array<i32>} : memref<1x10x10x8xf32, #tpu.memory_space<vmem>>, vector<1x1x10x8xf32>,
    %c0_53 = arith.constant 0 : index
    %c9 = arith.constant 9 : index
    %c0_54 = arith.constant 0 : index
    %c0_55 = arith.constant 0 : index
    %32 = vector.load %arg9[%c0_53, %c9, %c0_54, %c0_55] : memref<1x10x10x8xf32, #tpu.memory_space<vmem>>, vector<1x1x10x8xf32>
    tpu.vector_store %arg9[%c0_53, %c9, %c0_54, %c0_55], %30 {strides = array<i32>} : memref<1x10x10x8xf32, #tpu.memory_space<vmem>>, vector<1x1x10x8xf32>,
    %cst_56 = arith.constant 0.000000e+00 : f32
    %33 = vector.broadcast %cst_56 : f32 to vector<1x8x1x8xf32>
    %34 = vector.shape_cast %29 : vector<8x8x8xf32> to vector<1x8x8x8xf32>
    %35 = tpu.concatenate %33, %34, %33 in 2 : vector<1x8x1x8xf32>, vector<1x8x8x8xf32>, vector<1x8x1x8xf32> -> vector<1x8x10x8xf32>
    %c0_57 = arith.constant 0 : index
    %c1_58 = arith.constant 1 : index
    %c0_59 = arith.constant 0 : index
    %c0_60 = arith.constant 0 : index
    %36 = vector.load %arg9[%c0_57, %c1_58, %c0_59, %c0_60] : memref<1x10x10x8xf32, #tpu.memory_space<vmem>>, vector<1x8x10x8xf32>
    tpu.vector_store %arg9[%c0_57, %c1_58, %c0_59, %c0_60], %35 {strides = array<i32>} : memref<1x10x10x8xf32, #tpu.memory_space<vmem>>, vector<1x8x10x8xf32>,
    %c0_61 = arith.constant 0 : index
    %c0_62 = arith.constant 0 : index
    %c0_63 = arith.constant 0 : index
    %c0_64 = arith.constant 0 : index
    %37 = vector.load %arg9[%c0_61, %c0_62, %c0_63, %c0_64] : memref<1x10x10x8xf32, #tpu.memory_space<vmem>>, vector<1x8x8x8xf32>
    %38 = arith.truncf %37 : vector<1x8x8x8xf32> to vector<1x8x8x8xbf16>
    %c0_65 = arith.constant 0 : index
    %c0_66 = arith.constant 0 : index
    %c1_67 = arith.constant 1 : index
    %c0_68 = arith.constant 0 : index
    %39 = vector.load %arg9[%c0_65, %c0_66, %c1_67, %c0_68] : memref<1x10x10x8xf32, #tpu.memory_space<vmem>>, vector<1x8x8x8xf32>
    %40 = arith.truncf %39 : vector<1x8x8x8xf32> to vector<1x8x8x8xbf16>
    %c0_69 = arith.constant 0 : index
    %c0_70 = arith.constant 0 : index
    %c2_71 = arith.constant 2 : index
    %c0_72 = arith.constant 0 : index
    %41 = vector.load %arg9[%c0_69, %c0_70, %c2_71, %c0_72] : memref<1x10x10x8xf32, #tpu.memory_space<vmem>>, vector<1x8x8x8xf32>
    %42 = arith.truncf %41 : vector<1x8x8x8xf32> to vector<1x8x8x8xbf16>
    %c0_73 = arith.constant 0 : index
    %c1_74 = arith.constant 1 : index
    %c0_75 = arith.constant 0 : index
    %c0_76 = arith.constant 0 : index
    %43 = vector.load %arg9[%c0_73, %c1_74, %c0_75, %c0_76] : memref<1x10x10x8xf32, #tpu.memory_space<vmem>>, vector<1x8x8x8xf32>
    %44 = arith.truncf %43 : vector<1x8x8x8xf32> to vector<1x8x8x8xbf16>
    %c0_77 = arith.constant 0 : index
    %c1_78 = arith.constant 1 : index
    %c1_79 = arith.constant 1 : index
    %c0_80 = arith.constant 0 : index
    %45 = vector.load %arg9[%c0_77, %c1_78, %c1_79, %c0_80] : memref<1x10x10x8xf32, #tpu.memory_space<vmem>>, vector<1x8x8x8xf32>
    %46 = arith.truncf %45 : vector<1x8x8x8xf32> to vector<1x8x8x8xbf16>
    %c0_81 = arith.constant 0 : index
    %c1_82 = arith.constant 1 : index
    %c2_83 = arith.constant 2 : index
    %c0_84 = arith.constant 0 : index
    %47 = vector.load %arg9[%c0_81, %c1_82, %c2_83, %c0_84] : memref<1x10x10x8xf32, #tpu.memory_space<vmem>>, vector<1x8x8x8xf32>
    %48 = arith.truncf %47 : vector<1x8x8x8xf32> to vector<1x8x8x8xbf16>
    %c0_85 = arith.constant 0 : index
    %c2_86 = arith.constant 2 : index
    %c0_87 = arith.constant 0 : index
    %c0_88 = arith.constant 0 : index
    %49 = vector.load %arg9[%c0_85, %c2_86, %c0_87, %c0_88] : memref<1x10x10x8xf32, #tpu.memory_space<vmem>>, vector<1x8x8x8xf32>
    %50 = arith.truncf %49 : vector<1x8x8x8xf32> to vector<1x8x8x8xbf16>
    %c0_89 = arith.constant 0 : index
    %c2_90 = arith.constant 2 : index
    %c1_91 = arith.constant 1 : index
    %c0_92 = arith.constant 0 : index
    %51 = vector.load %arg9[%c0_89, %c2_90, %c1_91, %c0_92] : memref<1x10x10x8xf32, #tpu.memory_space<vmem>>, vector<1x8x8x8xf32>
    %52 = arith.truncf %51 : vector<1x8x8x8xf32> to vector<1x8x8x8xbf16>
    %c0_93 = arith.constant 0 : index
    %c2_94 = arith.constant 2 : index
    %c2_95 = arith.constant 2 : index
    %c0_96 = arith.constant 0 : index
    %53 = vector.load %arg9[%c0_93, %c2_94, %c2_95, %c0_96] : memref<1x10x10x8xf32, #tpu.memory_space<vmem>>, vector<1x8x8x8xf32>
    %54 = arith.truncf %53 : vector<1x8x8x8xf32> to vector<1x8x8x8xbf16>
    %55 = tpu.concatenate %38, %40, %42, %44, %46, %48, %50, %52, %54 in 3 : vector<1x8x8x8xbf16>, vector<1x8x8x8xbf16>, vector<1x8x8x8xbf16>, vector<1x8x8x8xbf16>, vector<1x8x8x8xbf16>, vector<1x8x8x8xbf16>, vector<1x8x8x8xbf16>, vector<1x8x8x8xbf16>, vector<1x8x8x8xbf16> -> vector<1x8x8x72xbf16>
    %56 = vector.shape_cast %55 : vector<1x8x8x72xbf16> to vector<8x8x72xbf16>
    %c0_97 = arith.constant 0 : index
    %c0_98 = arith.constant 0 : index
    %57 = vector.load %arg4[%c0_97, %c0_98] : memref<72x8xbf16, #tpu.memory_space<vmem>>, vector<72x8xbf16>
    %cst_99 = arith.constant dense<0.000000e+00> : vector<8x8x8xf32>
    %58 = tpu.matmul %56, %57, %cst_99 {dimension_numbers = #tpu.dot_dimension_numbers<[2], [0], [0, 1], [1], [0, 0, 0, 1, 1, 1], [], []>} : vector<8x8x72xbf16>, vector<72x8xbf16>, vector<8x8x8xf32> -> vector<8x8x8xf32>
    %c0_100 = arith.constant 0 : index
    %c0_101 = arith.constant 0 : index
    %c0_102 = arith.constant 0 : index
    %59 = vector.load %arg5[%c0_100, %c0_101, %c0_102] : memref<1x1x8xf32, #tpu.memory_space<vmem>>, vector<1x1x8xf32>
    %60 = vector.broadcast %59 : vector<1x1x8xf32> to vector<8x8x8xf32>
    %61 = arith.addf %58, %60 : vector<8x8x8xf32>
    %c0_103 = arith.constant 0 : index
    %c3_104 = arith.constant 3 : index
    %c0_105 = arith.constant 0 : index
    %c0_106 = arith.constant 0 : index
    %c0_107 = arith.constant 0 : index
    %62 = vector.load %arg1[%c0_103, %c3_104, %c0_105, %c0_106, %c0_107] : memref<1x4x9x9x4xbf16, #tpu.memory_space<vmem>>, vector<1x1x8x8x4xbf16>
    %63 = vector.shape_cast %62 : vector<1x1x8x8x4xbf16> to vector<1x8x8x4xbf16>
    %64 = vector.shape_cast %63 : vector<1x8x8x4xbf16> to vector<8x8x4xbf16>
    %c0_108 = arith.constant 0 : index
    %c0_109 = arith.constant 0 : index
    %65 = vector.load %arg6[%c0_108, %c0_109] : memref<4x8xbf16, #tpu.memory_space<vmem>>, vector<4x8xbf16>
    %cst_110 = arith.constant dense<0.000000e+00> : vector<8x8x8xf32>
    %66 = tpu.matmul %64, %65, %cst_110 {dimension_numbers = #tpu.dot_dimension_numbers<[2], [0], [0, 1], [1], [0, 0, 0, 1, 1, 1], [], []>} : vector<8x8x4xbf16>, vector<4x8xbf16>, vector<8x8x8xf32> -> vector<8x8x8xf32>
    %c0_111 = arith.constant 0 : index
    %c0_112 = arith.constant 0 : index
    %c0_113 = arith.constant 0 : index
    %67 = vector.load %arg7[%c0_111, %c0_112, %c0_113] : memref<1x1x8xf32, #tpu.memory_space<vmem>>, vector<1x1x8xf32>
    %68 = vector.broadcast %67 : vector<1x1x8xf32> to vector<8x8x8xf32>
    %69 = arith.addf %66, %68 : vector<8x8x8xf32>
    %70 = arith.addf %61, %69 : vector<8x8x8xf32>
    %cst_114 = arith.constant 0.000000e+00 : f32
    %71 = vector.broadcast %cst_114 : f32 to vector<8x8x8xf32>
    %72 = arith.cmpf oge, %70, %71 : vector<8x8x8xf32>
    %cst_115 = arith.constant 0.00999999977 : f32
    %73 = vector.broadcast %cst_115 : f32 to vector<8x8x8xf32>
    %74 = arith.mulf %73, %70 : vector<8x8x8xf32>
    %75 = arith.select %72, %70, %74 : vector<8x8x8xi1>, vector<8x8x8xf32>
    %76 = vector.shape_cast %75 : vector<8x8x8xf32> to vector<1x8x8x8xf32>
    %c0_116 = arith.constant 0 : index
    %c0_117 = arith.constant 0 : index
    %c0_118 = arith.constant 0 : index
    %c0_119 = arith.constant 0 : index
    %77 = vector.load %arg8[%c0_116, %c0_117, %c0_118, %c0_119] : memref<1x8x8x8xf32, #tpu.memory_space<vmem>>, vector<1x8x8x8xf32>
    tpu.vector_store %arg8[%c0_116, %c0_117, %c0_118, %c0_119], %76 {strides = array<i32>} : memref<1x8x8x8xf32, #tpu.memory_space<vmem>>, vector<1x8x8x8xf32>,
    return
  }
  func.func @transform_0(%arg0: i32) -> (i32, i32, i32, i32, i32) {
    %c0_i32 = arith.constant 0 : i32
    %c0_i32_0 = arith.constant 0 : i32
    %c0_i32_1 = arith.constant 0 : i32
    %c0_i32_2 = arith.constant 0 : i32
    %c0_i32_3 = arith.constant 0 : i32
    return %arg0, %c0_i32, %c0_i32_0, %c0_i32_1, %c0_i32_2 : i32, i32, i32, i32, i32
  }
  func.func @transform_1(%arg0: i32) -> (i32, i32) {
    %c0_i32 = arith.constant 0 : i32
    %c0_i32_0 = arith.constant 0 : i32
    %c0_i32_1 = arith.constant 0 : i32
    return %c0_i32, %c0_i32_0 : i32, i32
  }
  func.func @transform_2(%arg0: i32) -> (i32, i32, i32) {
    %c0_i32 = arith.constant 0 : i32
    %c0_i32_0 = arith.constant 0 : i32
    %c0_i32_1 = arith.constant 0 : i32
    %c0_i32_2 = arith.constant 0 : i32
    return %c0_i32, %c0_i32_0, %c0_i32_1 : i32, i32, i32
  }
  func.func @transform_3(%arg0: i32) -> (i32, i32) {
    %c0_i32 = arith.constant 0 : i32
    %c0_i32_0 = arith.constant 0 : i32
    %c0_i32_1 = arith.constant 0 : i32
    return %c0_i32, %c0_i32_0 : i32, i32
  }
  func.func @transform_4(%arg0: i32) -> (i32, i32, i32) {
    %c0_i32 = arith.constant 0 : i32
    %c0_i32_0 = arith.constant 0 : i32
    %c0_i32_1 = arith.constant 0 : i32
    %c0_i32_2 = arith.constant 0 : i32
    return %c0_i32, %c0_i32_0, %c0_i32_1 : i32, i32, i32
  }
  func.func @transform_5(%arg0: i32) -> (i32, i32) {
    %c0_i32 = arith.constant 0 : i32
    %c0_i32_0 = arith.constant 0 : i32
    %c0_i32_1 = arith.constant 0 : i32
    return %c0_i32, %c0_i32_0 : i32, i32
  }
  func.func @transform_6(%arg0: i32) -> (i32, i32, i32) {
    %c0_i32 = arith.constant 0 : i32
    %c0_i32_0 = arith.constant 0 : i32
    %c0_i32_1 = arith.constant 0 : i32
    %c0_i32_2 = arith.constant 0 : i32
    return %c0_i32, %c0_i32_0, %c0_i32_1 : i32, i32, i32
  }
  func.func @transform_7(%arg0: i32) -> (i32, i32, i32, i32) {
    %c0_i32 = arith.constant 0 : i32
    %c0_i32_0 = arith.constant 0 : i32
    %c0_i32_1 = arith.constant 0 : i32
    %c0_i32_2 = arith.constant 0 : i32
    return %arg0, %c0_i32, %c0_i32_0, %c0_i32_1 : i32, i32, i32, i32
  }
}

</mosaic_0001>

<bundles_post_ra>
// kernel: tpu_custom_call.1
= control target key start
LH: loop header
LB: loop body
LE: loop exit
PB: predicated region body
PF: predicated region fallthrough
CT: control target
= control target key end

     0   :  { %12 = vsyncpa [#allocation4], 0  ;;  %s3119_s0 = inlined_call_operand.vmem [shape: bf16[2,4,9,9,4], index: 0, kind: input, shape index: {}]   ;;  %s3120_s1 = inlined_call_operand.vmem [shape: bf16[36,8], index: 1, kind: input, shape index: {}]   ;;  %s3121_s2 = inlined_call_operand.vmem [shape: f32[1,1,8], index: 2, kind: input, shape index: {}]   ;;  %s3122_s3 = inlined_call_operand.vmem [shape: bf16[72,8], index: 3, kind: input, shape index: {}]   ;;  %s3123_s4 = inlined_call_operand.vmem [shape: f32[1,1,8], index: 4, kind: input, shape index: {}]   ;;  %s3124_s5 = inlined_call_operand.vmem [shape: bf16[4,8], index: 5, kind: input, shape index: {}]   ;;  %s3125_s6 = inlined_call_operand.vmem [shape: f32[1,1,8], index: 6, kind: input, shape index: {}]   ;;  %s3126_s7 = inlined_call_operand.hbm [shape: f32[2,8,8,8], index: 7, kind: output, shape index: {}]  }
   0x1   :  { %14 = vsyncpa [#allocation4 + $0x1], 0  ;;  %s2445_s24 = smov 0   ;;  %s2447_s25 = smov 0  }
   0x2   :  { %s2449_s26 = smov 0   ;;  %s2451_s27 = smov 0  }
   0x3 LB: > { %s2466_s28 = sadd.s32 4294967295, %s2389_s27   ;;  %s2087_s29 = sadd.s32 4294967294, %s2389_s27   ;;  %s2389_s27 = sphi %s2451_s27, %s3132_s27   ;;  %s2385_s26 = sphi %s2449_s26, %s3131_s26   ;;  %s2381_s25 = sphi %s2447_s25, %s3130_s25   ;;  %s2377_s24 = sphi %s2445_s24, %s3129_s24  }
   0x4   : > { %s2470_s30 = sadd.s32 1, %s2389_s27   ;;  %s179_s8 = sadd.s32 1, %s2385_s26 }
   0x5   : > { %s176_s9 = ssub.s32 %s2389_s27, %s2470_s30  ;;  %p189_p0 = scmp.ne.s32.totalorder %s2385_s26, %s2381_s25 }
   0x6   : > { %p177_p1 = scmp.eq.s32.totalorder %s176_s9, 0  ;;  %p190_p2 = scmp.eq.s32.totalorder %s2466_s28, 1 }
   0x7   : > { %p195_p3 = scmp.ne.s32.totalorder %s2381_s25, %s2377_s24  ;;  %p196_p4 = scmp.eq.s32.totalorder %s2087_s29, 1 }
   0x8   : > { %s2481_s10 = scalar_select %p177_p1, %s2385_s26, %s179_s8  }
   0x9   : > { %p2483_p5 = por %p190_p2, %p189_p0  ;;  %p2487_p6 = por %p196_p4, %p195_p3 }
   0xa   : > { %p2090_p7 = scmp.ge.s32.totalorder %s2389_s27, 1  ;;  %p240_p8 = scmp.lt.s32.totalorder %s2389_s27, 3 }
   0xc   : > { %p241_p9 = pnand %p2090_p7, %p240_p8 }
   0xd   : > { %p272_p10 = scmp.lt.s32.totalorder (!%p241_p9), %s2466_s28, 1  ;;  %s2391_s18 = smov (!%p241_p9), 16  }
   0xe   : > { %244 = sbr.rel (%p241_p9) target bundleno = 771 (0x303), region = 48  ;;  %s2392_s19 = smov (!%p241_p9), 4  }
   0xf   : > { %s2393_s20 = smov (!%p241_p9), 12   ;;  %s2394_s21 = smov (!%p241_p9), 8  }
  0x10   : > { %s2395_s22 = smov (!%p241_p9), 20   ;;  %s2396_s23 = smov (!%p241_p9), 24  }
  0x11   : > { %s2397_s29 = smov (!%p241_p9), 28   ;;  %s2398_s8 = smov (!%p241_p9), 32  }
  0x12   : > { %s269_s16 = sand.u32 (!%p241_p9), 1, %s2381_s25  }
  0x13   : > { %s273_s13 = scalar_select %p272_p10, %s2466_s28, 1  ;;  %vm1060_vm0 = vcmask 1041408   ;;  %vm859_vm1 = vcmask 31744   ;;  %vm884_vm2 = vcmask 64512   ;;  %vm901_vm3 = vcmask 97280  }
  0x14   : > { %vm918_vm4 = vcmask 130048   ;;  %vm935_vm5 = vcmask 162816   ;;  %vm952_vm6 = vcmask 195584   ;;  %vm969_vm7 = vcmask 228352  }
  0x15   : > { %s2270_s14 = smul.u32 288, %s273_s13  ;;  %vm986_vm8 = vcmask 261120   ;;  %vm1047_vm9 = vcmask 293888   ;;  %vm1118_vm10 = vcmask 58368   ;;  %vm1147_vm12 = vcmask 1040384  }
  0x17   : > { %s2498_s17 = scalar_lea.vmem %s3119_s0, %s2270_s14  ;;  %s2403_s14 = smov 40  }
  0x18   : > { %v2110_v0 = vld [vmem:[%s2498_s17 + $0xe0] sm:$0xf]  ;;  %v2093_v1 = vld [vmem:[%s2498_s17 + $0x48] sm:$0xf]  ;;  %v2094_v4 = vld [vmem:[%s2498_s17 + $0x50] sm:$0xf] }
  0x19   : > { %v556_v2 = vunpack.c.l.b16 %v2110_v0  ;;  %v363_v3 = vunpack.c.l.b16 %v2093_v1  ;;  %v2151_v5 = vld [vmem:[%s2498_s17] sm:$0xf]  ;;  %v2246_v6 = vld [vmem:[%s2498_s17] sm:$0x10]  ;;  %v2155_v8 = vld [vmem:[%s2498_s17 + $0x8] sm:$0xf]  ;;  %v364_v13 = vunpack.c.l.b16 %v2094_v4 }
  0x1a   : > { %v2152_v7 = vor.u32 %v2246_v6, %v2151_v5  ;;  %v2247_v9 = vld [vmem:[%s2498_s17 + $0x8] sm:$0x10]  ;;  %v2101_v12 = vld [vmem:[%s2498_s17 + $0x90] sm:$0xf]  ;;  %v2117_v15 = vld [vmem:[%s2498_s17 + $0x94] sm:$0x1] }
  0x1b   : > { %v564_v10 = vpack.c.b16 %v556_v2, %v556_v2  ;;  %v371_v11 = vpack.c.b16 %v363_v3, %v363_v3  ;;  %v2156_v17 = vor.u32 %v2247_v9, %v2155_v8  ;;  %v2102_v19 = vld [vmem:[%s2498_s17 + $0x98] sm:$0xf]  ;;  %v2118_v20 = vld [vmem:[%s2498_s17 + $0x9c] sm:$0x1]  ;;  %v515_v21 = vunpack.c.l.b16 %v2101_v12  ;;  %v2125_v40 = vld [vmem:[%s2498_s17 + $0x8] sm:$0xf] }
  0x1c   : > { %v438_v14 = vshll.u32 %v2152_v7, 16  ;;  %v436_v16 = vshrl.u32 %v2152_v7, 16  ;;  %v595_v22 = vunpack.c.l.b16 %v2117_v15  ;;  %v372_v23 = vpack.c.b16 %v364_v13, %v364_v13  ;;  %v2109_v29 = vld [vmem:[%s2498_s17 + $0xd8] sm:$0xf]  ;;  %v2141_v43 = vld [vmem:[%s2498_s17 + $0xc] sm:$0x1] }
  0x1d   : > { %573 = vrot.lane.b32.xlu1 %v564_v10, %s2391_s18  ;;  %379 = vrot.lane.b32.xlu0 %v371_v11, %s2392_s19  ;;  %v523_v24 = vpack.c.b16 %v515_v21, %v515_v21  ;;  %v445_v26 = vshll.u32 %v2156_v17, 16  ;;  %v516_v27 = vunpack.c.l.b16 %v2102_v19  ;;  %v596_v28 = vunpack.c.l.b16 %v2118_v20  ;;  %v2126_v47 = vld [vmem:[%s2498_s17 + $0x10] sm:$0xf]  ;;  %v2142_v48 = vld [vmem:[%s2498_s17 + $0x14] sm:$0x1] }
  0x1e   : > { %v440_v18 = vrot.slane %v438_v14, 1  ;;  %v603_v30 = vpack.c.b16 %v595_v22, %v515_v21  ;;  %v555_v31 = vunpack.c.l.b16 %v2109_v29  ;;  %v443_v32 = vshrl.u32 %v2156_v17, 16  ;;  %v2133_v55 = vld [vmem:[%s2498_s17 + $0x50] sm:$0xf]  ;;  %v2134_v56 = vld [vmem:[%s2498_s17 + $0x58] sm:$0xf] }
  0x1f   : > { %531 = vrot.lane.b32.xlu2 %v523_v24, %s2393_s20  ;;  %v447_v33 = vrot.slane %v445_v26, 1  ;;  %v604_v34 = vpack.c.b16 %v596_v28, %v516_v27  ;;  %v524_v35 = vpack.c.b16 %v516_v27, %v516_v27  ;;  %v691_v46 = vunpack.c.l.b16 %v2125_v40  ;;  %v2095_v63 = vld [vmem:[%s2498_s17 + $0x58] sm:$0xf]  ;;  %v2159_v3 = vld [vmem:[%s2498_s17 + $0x10] sm:$0xf] }
  0x20   : > { %v441_v25 = vor.u32 %v440_v18, %v436_v16  ;;  %v614_v36 = vshll.u32 %v603_v30, 16  ;;  %v563_v37 = vpack.c.b16 %v555_v31, %v555_v31  ;;  %v612_v41 = vshrl.u32 %v603_v30, 16  ;;  %v2248_v4 = vld [vmem:[%s2498_s17 + $0x10] sm:$0x10]  ;;  %v2163_v5 = vld [vmem:[%s2498_s17 + $0x18] sm:$0xf] }
  0x21   : > { %v448_v38 = vor.u32 %v447_v33, %v443_v32  ;;  %v621_v39 = vshll.u32 %v604_v34, 16  ;;  %v619_v44 = vshrl.u32 %v604_v34, 16  ;;  %v771_v50 = vunpack.c.l.b16 %v2141_v43  ;;  %v2249_v6 = vld [vmem:[%s2498_s17 + $0x18] sm:$0x10]  ;;  %v2096_v15 = vld [vmem:[%s2498_s17 + $0x60] sm:$0xf] }
  0x22   : > { %v616_v42 = vrot.slane %v614_v36, 1  ;;  %v699_v52 = vpack.c.b16 %v691_v46, %v691_v46  ;;  %v692_v53 = vunpack.c.l.b16 %v2126_v47  ;;  %v772_v54 = vunpack.c.l.b16 %v2142_v48  ;;  %v2119_v26 = vld [vmem:[%s2498_s17 + $0xa4] sm:$0x1]  ;;  %v2120_v27 = vld [vmem:[%s2498_s17 + $0xac] sm:$0x1] }
  0x23   : > { %v623_v45 = vrot.slane %v621_v39, 1  ;;  %v779_v57 = vpack.c.b16 %v771_v50, %v691_v46  ;;  %v731_v58 = vunpack.c.l.b16 %v2133_v55  ;;  %v732_v59 = vunpack.c.l.b16 %v2134_v56  ;;  %v2104_v29 = vld [vmem:[%s2498_s17 + $0xa8] sm:$0xf]  ;;  %v2128_v56 = vld [vmem:[%s2498_s17 + $0x20] sm:$0xf] }
  0x24   : > { %v617_v49 = vor.u32 %v616_v42, %v612_v41  ;;  %v780_v60 = vpack.c.b16 %v772_v54, %v692_v53  ;;  %v700_v61 = vpack.c.b16 %v692_v53, %v692_v53  ;;  %v2160_v9 = vor.u32 %v2248_v4, %v2159_v3  ;;  %v2112_v41 = vld [vmem:[%s2498_s17 + $0xf0] sm:$0xf]  ;;  %v2144_v53 = vld [vmem:[%s2498_s17 + $0x24] sm:$0x1]  ;;  %v2136_v3 = vld [vmem:[%s2498_s17 + $0x68] sm:$0xf] }
  0x25   : > { %381 = vrot.lane.b32.xlu0 %v372_v23, %s2392_s19  ;;  %491 = vrot.lane.b32.xlu1 %v441_v25, %s2394_s21  ;;  %v624_v51 = vor.u32 %v623_v45, %v619_v44  ;;  %v790_v62 = vshll.u32 %v779_v57, 16  ;;  %v739_v0 = vpack.c.b16 %v731_v58, %v731_v58  ;;  %v740_v1 = vpack.c.b16 %v732_v59, %v732_v59  ;;  %v2103_v25 = vld [vmem:[%s2498_s17 + $0xa0] sm:$0xf] }
  0x26   : > { %v797_v2 = vshll.u32 %v780_v60, 16  ;;  %v788_v7 = vshrl.u32 %v779_v57, 16  ;;  %v795_v10 = vshrl.u32 %v780_v60, 16  ;;  %v365_v12 = vunpack.c.l.b16 %v2095_v63 }
  0x27   : > { %533 = vrot.lane.b32.xlu2 %v524_v35, %s2393_s20  ;;  %v792_v8 = vrot.slane %v790_v62, 1  ;;  %v2164_v13 = vor.u32 %v2249_v6, %v2163_v5  ;;  %v452_v16 = vshll.u32 %v2160_v9, 16  ;;  %v366_v20 = vunpack.c.l.b16 %v2096_v15  ;;  %v2111_v35 = vld [vmem:[%s2498_s17 + $0xe8] sm:$0xf] }
  0x28   : > { %v799_v11 = vrot.slane %v797_v2, 1  ;;  %v373_v18 = vpack.c.b16 %v365_v12, %v365_v12  ;;  %v450_v21 = vshrl.u32 %v2160_v9, 16  ;;  %v517_v30 = vunpack.c.l.b16 %v2103_v25  ;;  %v2250_v9 = vld [vmem:[%s2498_s17 + $0x20] sm:$0x10] }
  0x29   : > { %v793_v14 = vor.u32 %v792_v8, %v788_v7  ;;  %v459_v19 = vshll.u32 %v2164_v13, 16  ;;  %v454_v22 = vrot.slane %v452_v16, 1  ;;  %v457_v23 = vshrl.u32 %v2164_v13, 16  ;;  %v2167_v8 = vld [vmem:[%s2498_s17 + $0x20] sm:$0xf] }
  0x2a   : > { %v800_v17 = vor.u32 %v799_v11, %v795_v10  ;;  %v374_v28 = vpack.c.b16 %v366_v20, %v366_v20  ;;  %v597_v31 = vunpack.c.l.b16 %v2119_v26  ;;  %v598_v34 = vunpack.c.l.b16 %v2120_v27 }
  0x2b   : > { %v461_v24 = vrot.slane %v459_v19, 1  ;;  %v455_v32 = vor.u32 %v454_v22, %v450_v21  ;;  %v518_v36 = vunpack.c.l.b16 %v2104_v29  ;;  %v525_v40 = vpack.c.b16 %v517_v30, %v517_v30  ;;  %v2251_v19 = vld [vmem:[%s2498_s17 + $0x28] sm:$0x10]  ;;  %v2121_v29 = vld [vmem:[%s2498_s17 + $0xb4] sm:$0x1] }
  0x2c   : > { %v558_v46 = vunpack.c.l.b16 %v2112_v41  ;;  %v774_v60 = vunpack.c.l.b16 %v2144_v53  ;;  %v694_v62 = vunpack.c.l.b16 %v2128_v56  ;;  %v734_v10 = vunpack.c.l.b16 %v2136_v3  ;;  %v2145_v56 = vld [vmem:[%s2498_s17 + $0x2c] sm:$0x1]  ;;  %v2146_v3 = vld [vmem:[%s2498_s17 + $0x34] sm:$0x1] }
  0x2d   : > { %571 = vrot.lane.b32.xlu0 %v563_v37, %s2391_s18  ;;  %493 = vrot.lane.b32.xlu1 %v448_v38, %s2394_s21  ;;  %v462_v33 = vor.u32 %v461_v24, %v457_v23  ;;  %v605_v37 = vpack.c.b16 %v597_v31, %v517_v30  ;;  %v557_v38 = vunpack.c.l.b16 %v2111_v35  ;;  %v606_v39 = vpack.c.b16 %v598_v34, %v518_v36  ;;  %v2098_v23 = vld [vmem:[%s2498_s17 + $0x70] sm:$0xf] }
  0x2e   : > { %v526_v43 = vpack.c.b16 %v518_v36, %v518_v36  ;;  %v566_v54 = vpack.c.b16 %v558_v46, %v558_v46  ;;  %v702_v4 = vpack.c.b16 %v694_v62, %v694_v62  ;;  %v2168_v15 = vor.u32 %v2250_v9, %v2167_v8  ;;  %v2106_v36 = vld [vmem:[%s2498_s17 + $0xb8] sm:$0xf]  ;;  %v2137_v9 = vld [vmem:[%s2498_s17 + $0x70] sm:$0xf] }
  0x2f   : > { %667 = vrot.lane.b32.xlu2 %v617_v49, %s2395_s22  ;;  %v628_v42 = vshll.u32 %v605_v37, 16  ;;  %v565_v44 = vpack.c.b16 %v557_v38, %v557_v38  ;;  %v635_v45 = vshll.u32 %v606_v39, 16  ;;  %v626_v47 = vshrl.u32 %v605_v37, 16 }
  0x30   : > { %v633_v49 = vshrl.u32 %v606_v39, 16  ;;  %v742_v16 = vpack.c.b16 %v734_v10, %v734_v10  ;;  %v466_v22 = vshll.u32 %v2168_v15, 16  ;;  %v368_v26 = vunpack.c.l.b16 %v2098_v23 }
  0x31   : > { %v630_v48 = vrot.slane %v628_v42, 1  ;;  %v637_v50 = vrot.slane %v635_v45, 1  ;;  %v464_v27 = vshrl.u32 %v2168_v15, 16  ;;  %v599_v35 = vunpack.c.l.b16 %v2121_v29  ;;  %v2113_v45 = vld [vmem:[%s2498_s17 + $0xf8] sm:$0xf] }
  0x32   : > { %v520_v41 = vunpack.c.l.b16 %v2106_v36  ;;  %v776_v8 = vunpack.c.l.b16 %v2146_v3 }
  0x33   : > { %v631_v55 = vor.u32 %v630_v48, %v626_v47  ;;  %v638_v57 = vor.u32 %v637_v50, %v633_v49  ;;  %v2114_v49 = vld [vmem:[%s2498_s17 + $0x100] sm:$0xf]  ;;  %v559_v50 = vunpack.c.l.b16 %v2113_v45 }
  0x34   : > { %v528_v47 = vpack.c.b16 %v520_v41, %v520_v41  ;;  %v560_v53 = vunpack.c.l.b16 %v2114_v49 }
  0x35   : > { %669 = vrot.lane.b32.xlu0 %v624_v51, %s2395_s22  ;;  %707 = vrot.lane.b32.xlu1 %v699_v52, %s2396_s23  ;;  %v2127_v51 = vld [vmem:[%s2498_s17 + $0x18] sm:$0xf]  ;;  %v2143_v52 = vld [vmem:[%s2498_s17 + $0x1c] sm:$0x1] }
  0x36   : > { %v693_v58 = vunpack.c.l.b16 %v2127_v51  ;;  %v773_v59 = vunpack.c.l.b16 %v2143_v52 }
  0x37   : > { %709 = vrot.lane.b32.xlu2 %v700_v61, %s2396_s23  ;;  %v2135_v61 = vld [vmem:[%s2498_s17 + $0x60] sm:$0xf] }
  0x38   : > { %v733_v63 = vunpack.c.l.b16 %v2135_v61  ;;  %v701_v2 = vpack.c.b16 %v693_v58, %v693_v58 }
  0x3a   : > { %v741_v5 = vpack.c.b16 %v733_v63, %v733_v63  ;;  %v2130_v63 = vld [vmem:[%s2498_s17 + $0x30] sm:$0xf] }
  0x3d   : > { %747 = vrot.lane.b32.xlu0 %v739_v0, %s2397_s29  ;;  %749 = vrot.lane.b32.xlu1 %v740_v1, %s2397_s29  ;;  %v781_v0 = vpack.c.b16 %v773_v59, %v693_v58  ;;  %v782_v1 = vpack.c.b16 %v774_v60, %v694_v62  ;;  %v2129_v59 = vld [vmem:[%s2498_s17 + $0x28] sm:$0xf]  ;;  %v568_v60 = vpack.c.b16 %v560_v53, %v560_v53  ;;  %v775_v62 = vunpack.c.l.b16 %v2145_v56  ;;  %v2107_v53 = vld [vmem:[%s2498_s17 + $0xc0] sm:$0xf] }
  0x3f   : > { %843 = vrot.lane.b32.xlu2 %v793_v14, %s2398_s8  ;;  %v804_v6 = vshll.u32 %v781_v0, 16  ;;  %v811_v7 = vshll.u32 %v782_v1, 16  ;;  %v802_v11 = vshrl.u32 %v781_v0, 16  ;;  %v809_v13 = vshrl.u32 %v782_v1, 16 }
  0x41   : > { %v806_v12 = vrot.slane %v804_v6, 1  ;;  %v813_v14 = vrot.slane %v811_v7, 1 }
  0x43   : > { %v807_v20 = vor.u32 %v806_v12, %v802_v11  ;;  %v814_v21 = vor.u32 %v813_v14, %v809_v13  ;;  %v2138_v13 = vld [vmem:[%s2498_s17 + $0x78] sm:$0xf]  ;;  %v735_v14 = vunpack.c.l.b16 %v2137_v9  ;;  %v2116_v9 = vld [vmem:[%s2498_s17 + $0x110] sm:$0xf] }
  0x45   : > { %845 = vrot.lane.b32.xlu0 %v800_v17, %s2398_s8  ;;  %383 = vrot.lane.b32.xlu1 %v373_v18, %s2392_s19  ;;  %v2097_v17 = vld [vmem:[%s2498_s17 + $0x68] sm:$0xf] }
  0x46   : > { %v2171_v18 = vld [vmem:[%s2498_s17 + $0x28] sm:$0xf]  ;;  %v367_v24 = vunpack.c.l.b16 %v2097_v17  ;;  %v1007_v17 = vld [vmem:[%s3120_s1 + $0x10] sm:$0x3] }
  0x47   : > { %385 = vrot.lane.b32.xlu2 %v374_v28, %s2392_s19  ;;  %v2172_v25 = vor.u32 %v2251_v19, %v2171_v18  ;;  %v468_v28 = vrot.slane %v466_v22, 1  ;;  %v736_v18 = vunpack.c.l.b16 %v2138_v13  ;;  %v743_v22 = vpack.c.b16 %v735_v14, %v735_v14 }
  0x48   : > { %v375_v30 = vpack.c.b16 %v367_v24, %v367_v24  ;;  %v562_v14 = vunpack.c.l.b16 %v2116_v9 }
  0x49   : > { %v473_v31 = vshll.u32 %v2172_v25, 16  ;;  %v469_v34 = vor.u32 %v468_v28, %v464_v27  ;;  %v471_v37 = vshrl.u32 %v2172_v25, 16  ;;  %v2175_v27 = vld [vmem:[%s2498_s17 + $0x30] sm:$0xf]  ;;  %v2252_v28 = vld [vmem:[%s2498_s17 + $0x30] sm:$0x10]  ;;  %v744_v29 = vpack.c.b16 %v736_v18, %v736_v18 }
  0x4b   : > { %v475_v38 = vrot.slane %v473_v31, 1  ;;  %v2099_v31 = vld [vmem:[%s2498_s17 + $0x78] sm:$0xf] }
  0x4d   : > { %495 = vrot.lane.b32.xlu0 %v455_v32, %s2394_s21  ;;  %497 = vrot.lane.b32.xlu1 %v462_v33, %s2394_s21  ;;  %v2105_v32 = vld [vmem:[%s2498_s17 + $0xb0] sm:$0xf]  ;;  %v376_v33 = vpack.c.b16 %v368_v26, %v368_v26 }
  0x4e   : > { %v519_v39 = vunpack.c.l.b16 %v2105_v32  ;;  %v2100_v32 = vld [vmem:[%s2498_s17 + $0x80] sm:$0xf] }
  0x4f   : > { %535 = vrot.lane.b32.xlu2 %v525_v40, %s2393_s20  ;;  %v2122_v40 = vld [vmem:[%s2498_s17 + $0xbc] sm:$0x1] }
  0x50   : > { %v607_v42 = vpack.c.b16 %v599_v35, %v519_v39  ;;  %v527_v46 = vpack.c.b16 %v519_v39, %v519_v39  ;;  %v2253_v35 = vld [vmem:[%s2498_s17 + $0x38] sm:$0x10] }
  0x52   : > { %v642_v48 = vshll.u32 %v607_v42, 16 }
  0x55   : > { %537 = vrot.lane.b32.xlu0 %v526_v43, %s2393_s20  ;;  %575 = vrot.lane.b32.xlu1 %v565_v44, %s2391_s18  ;;  %v476_v43 = vor.u32 %v475_v38, %v471_v37  ;;  %v600_v44 = vunpack.c.l.b16 %v2122_v40  ;;  %v2176_v38 = vor.u32 %v2252_v28, %v2175_v27  ;;  %v2255_v40 = vld [vmem:[%s3120_s1 + $0x8] sm:$0xff]  ;;  %v570_v27 = vpack.c.b16 %v562_v14, %v562_v14 }
  0x57   : > { %577 = vrot.lane.b32.xlu2 %v566_v54, %s2391_s18  ;;  %v608_v51 = vpack.c.b16 %v600_v44, %v520_v41  ;;  %v640_v54 = vshrl.u32 %v607_v42, 16  ;;  %v369_v41 = vunpack.c.l.b16 %v2099_v31  ;;  %v370_v42 = vunpack.c.l.b16 %v2100_v32 }
  0x58   : > { %v480_v45 = vshll.u32 %v2176_v38, 16 }
  0x59   : > { %v649_v58 = vshll.u32 %v608_v51, 16  ;;  %v647_v0 = vshrl.u32 %v608_v51, 16  ;;  %v377_v49 = vpack.c.b16 %v369_v41, %v369_v41  ;;  %v2132_v41 = vld [vmem:[%s2498_s17 + $0x40] sm:$0xf] }
  0x5b   : > { %v651_v1 = vrot.slane %v649_v58, 1 }
  0x5d   : > { %671 = vrot.lane.b32.xlu0 %v631_v55, %s2395_s22  ;;  %673 = vrot.lane.b32.xlu1 %v638_v57, %s2395_s22  ;;  %v644_v55 = vrot.slane %v642_v48, 1  ;;  %v567_v57 = vpack.c.b16 %v559_v50, %v559_v50  ;;  %v652_v7 = vor.u32 %v651_v1, %v647_v0  ;;  %v2254_v48 = vld [vmem:[%s3120_s1] sm:$0xff]  ;;  %v378_v50 = vpack.c.b16 %v370_v42, %v370_v42 }
  0x5e   : > { %v2148_v42 = vld [vmem:[%s2498_s17 + $0x44] sm:$0x1] }
  0x5f   : > { %711 = vrot.lane.b32.xlu2 %v701_v2, %s2396_s23  ;;  %v645_v61 = vor.u32 %v644_v55, %v640_v54  ;;  %v695_v2 = vunpack.c.l.b16 %v2129_v59  ;;  %v478_v54 = vshrl.u32 %v2176_v38, 16  ;;  %v482_v55 = vrot.slane %v480_v45, 1 }
  0x61   : > { %v783_v6 = vpack.c.b16 %v775_v62, %v695_v2  ;;  %v703_v10 = vpack.c.b16 %v695_v2, %v695_v2  ;;  %v2124_v62 = vld [vmem:[%s2498_s17 + $0xcc] sm:$0x1] }
  0x63   : > { %v818_v12 = vshll.u32 %v783_v6, 16  ;;  %v816_v19 = vshrl.u32 %v783_v6, 16 }
  0x65   : > { %713 = vrot.lane.b32.xlu0 %v702_v4, %s2396_s23  ;;  %751 = vrot.lane.b32.xlu1 %v741_v5, %s2397_s29  ;;  %v696_v5 = vunpack.c.l.b16 %v2130_v63  ;;  %v483_v63 = vor.u32 %v482_v55, %v478_v54 }
  0x67   : > { %753 = vrot.lane.b32.xlu2 %v742_v16, %s2397_s29  ;;  %v704_v11 = vpack.c.b16 %v696_v5, %v696_v5  ;;  %v784_v15 = vpack.c.b16 %v776_v8, %v696_v5  ;;  %v602_v5 = vunpack.c.l.b16 %v2124_v62  ;;  %v2115_v8 = vld [vmem:[%s2498_s17 + $0x108] sm:$0xf] }
  0x68   : > { %v561_v13 = vunpack.c.l.b16 %v2115_v8 }
  0x69   : > { %v825_v23 = vshll.u32 %v784_v15, 16  ;;  %v823_v36 = vshrl.u32 %v784_v15, 16  ;;  %v278_v15 = vld [vmem:[%s2498_s17] sm:$0xf] }
  0x6b   : > { %v827_v37 = vrot.slane %v825_v23, 1 }
  0x6d   : > { %847 = vrot.lane.b32.xlu0 %v807_v20, %s2398_s8  ;;  %849 = vrot.lane.b32.xlu1 %v814_v21, %s2398_s8  ;;  %v820_v20 = vrot.slane %v818_v12, 1  ;;  %v1041_v21 = vunpack.c.l.b16 %v1007_v17  ;;  %v828_v44 = vor.u32 %v827_v37, %v823_v36  ;;  %v2147_v36 = vld [vmem:[%s2498_s17 + $0x3c] sm:$0x1] }
  0x6f   : > { %387 = vrot.lane.b32.xlu2 %v375_v30, %s2392_s19  ;;  %v1044_v26 = vpack.c.b16 %v1041_v21, %v1041_v21  ;;  %v821_v30 = vor.u32 %v820_v20, %v816_v19  ;;  %v279_v21 = vld [vmem:[%s2498_s17 + $0x8] sm:$0xf] }
  0x75   : > { %389 = vrot.lane.b32.xlu0 %v376_v33, %s2392_s19  ;;  %499 = vrot.lane.b32.xlu1 %v469_v34, %s2394_s21  ;;  %v1062_v33 = vsel %vm1060_vm0, %v1044_v26, 0  ;;  %v2179_v34 = vld [vmem:[%s2498_s17 + $0x38] sm:$0xf]  ;;  %v569_v26 = vpack.c.b16 %v561_v13, %v561_v13 }
  0x76   : > { %1069 = vmatpush.bf16.msra.mxu0 %v1062_v33 }
  0x77   : > { %501 = vrot.lane.b32.xlu2 %v476_v43, %s2394_s21  ;;  %v2180_v43 = vor.u32 %v2253_v35, %v2179_v34 }
  0x79   : > { %v2584_v52 = vpop.permute.xlu2 %531  ;;  %v487_v51 = vshll.u32 %v2180_v43, 16  ;;  %v485_v58 = vshrl.u32 %v2180_v43, 16 }
  0x7a   : > { %1070 = vmatpush.bf16.msra.mxu0 %v2255_v40 }
  0x7b   : > { %v489_v59 = vrot.slane %v487_v51, 1  ;;  %v698_v51 = vunpack.c.l.b16 %v2132_v41 }
  0x7d   : > { %539 = vrot.lane.b32.xlu0 %v527_v46, %s2393_s20  ;;  %541 = vrot.lane.b32.xlu1 %v528_v47, %s2393_s20  ;;  %v490_v6 = vor.u32 %v489_v59, %v485_v58 }
  0x7e   : > { %1071 = vmatpush.bf16.msra.mxu0 %v2254_v48 }
  0x7f   : > { %579 = vrot.lane.b32.xlu2 %v567_v57, %s2391_s18  ;;  %v2123_v57 = vld [vmem:[%s2498_s17 + $0xc4] sm:$0x1] }
  0x80   : > { %v601_v0 = vunpack.c.l.b16 %v2123_v57  ;;  %v2140_v57 = vld [vmem:[%s2498_s17 + $0x88] sm:$0xf] }
  0x81   : > { %v2593_v4 = vpop.permute.xlu2 %533 }
  0x85   : > { %581 = vrot.lane.b32.xlu0 %v568_v60, %s2391_s18  ;;  %675 = vrot.lane.b32.xlu1 %v645_v61, %s2395_s22  ;;  %v521_v60 = vunpack.c.l.b16 %v2107_v53  ;;  %v2108_v61 = vld [vmem:[%s2498_s17 + $0xc8] sm:$0xf]  ;;  %v778_v53 = vunpack.c.l.b16 %v2148_v42 }
  0x86   : > { %v522_v3 = vunpack.c.l.b16 %v2108_v61  ;;  %v738_v61 = vunpack.c.l.b16 %v2140_v57 }
  0x87   : > { %677 = vrot.lane.b32.xlu2 %v652_v7, %s2395_s22  ;;  %v529_v7 = vpack.c.b16 %v521_v60, %v521_v60  ;;  %v786_v62 = vpack.c.b16 %v778_v53, %v698_v51 }
  0x88   : > { %v530_v17 = vpack.c.b16 %v522_v3, %v522_v3 }
  0x89   : > { %v2600_v16 = vpop.permute.xlu2 %667 }
  0x8d   : > { %715 = vrot.lane.b32.xlu0 %v703_v10, %s2396_s23  ;;  %717 = vrot.lane.b32.xlu1 %v704_v11, %s2396_s23  ;;  %v609_v10 = vpack.c.b16 %v601_v0, %v521_v60  ;;  %v610_v11 = vpack.c.b16 %v602_v5, %v522_v3  ;;  %v706_v0 = vpack.c.b16 %v698_v51, %v698_v51 }
  0x8f   : > { %v2607_v24 = vpop.permute.xlu1 %573  ;;  %v2609_v25 = vpop.permute.xlu0 %379  ;;  %755 = vrot.lane.b32.xlu2 %v743_v22, %s2397_s29  ;;  %v656_v18 = vshll.u32 %v609_v10, 16  ;;  %v663_v22 = vshll.u32 %v610_v11, 16  ;;  %v661_v34 = vshrl.u32 %v610_v11, 16  ;;  %v839_v11 = vshll.u32 %v786_v62, 16 }
  0x90   : > { %v862_v23 = vsel %vm859_vm1, %v278_v15, %v2609_v25  ;;  %v837_v15 = vshrl.u32 %v786_v62, 16 }
  0x91   : > { %v2619_v39 = vpop.permute.xlu2 %709  ;;  %v658_v31 = vrot.slane %v656_v18, 1  ;;  %v665_v35 = vrot.slane %v663_v22, 1 }
  0x95   : > { %757 = vrot.lane.b32.xlu0 %v744_v29, %s2397_s29  ;;  %851 = vrot.lane.b32.xlu1 %v821_v30, %s2398_s8  ;;  %v2131_v29 = vld [vmem:[%s2498_s17 + $0x38] sm:$0xf]  ;;  %v654_v30 = vshrl.u32 %v609_v10, 16  ;;  %v746_v10 = vpack.c.b16 %v738_v61, %v738_v61 }
  0x96   : > { %v697_v38 = vunpack.c.l.b16 %v2131_v29 }
  0x97   : > { %v382_v46 = vpop.permute.xlu0 %381  ;;  %v492_v47 = vpop.permute.xlu1 %491  ;;  %853 = vrot.lane.b32.xlu2 %v828_v44, %s2398_s8  ;;  %v659_v43 = vor.u32 %v658_v31, %v654_v30  ;;  %v777_v44 = vunpack.c.l.b16 %v2147_v36  ;;  %v280_v30 = vld [vmem:[%s2498_s17 + $0x10] sm:$0xf]  ;;  %v281_v31 = vld [vmem:[%s2498_s17 + $0x18] sm:$0xf] }
  0x98   : > { %v886_v28 = vsel %vm884_vm2, %v862_v23, %v492_v47  ;;  %v865_v32 = vsel %vm859_vm1, %v279_v21, %v382_v46  ;;  %v666_v47 = vor.u32 %v665_v35, %v661_v34 }
  0x99   : > { %v2631_v56 = vpop.permute.xlu2 %843  ;;  %v903_v37 = vsel %vm901_vm3, %v886_v28, %v2584_v52 }
  0x9d   : > { %391 = vrot.lane.b32.xlu0 %v377_v49, %s2392_s19  ;;  %393 = vrot.lane.b32.xlu1 %v378_v50, %s2392_s19  ;;  %v705_v49 = vpack.c.b16 %v697_v38, %v697_v38  ;;  %v2139_v50 = vld [vmem:[%s2498_s17 + $0x80] sm:$0xf]  ;;  %s2400_s19 = smov 48  }
  0x9e   : > { %v737_v60 = vunpack.c.l.b16 %v2139_v50 }
  0x9f   : > { %v572_v1 = vpop.permute.xlu0 %571  ;;  %v494_v2 = vpop.permute.xlu1 %493  ;;  %503 = vrot.lane.b32.xlu2 %v483_v63, %s2394_s21 }
  0xa0   : > { %v888_v33 = vsel %vm884_vm2, %v865_v32, %v494_v2  ;;  %v920_v40 = vsel %vm918_vm4, %v903_v37, %v572_v1 }
  0xa1   : > { %v2641_v12 = vpop.permute.xlu2 %385  ;;  %v905_v45 = vsel %vm901_vm3, %v888_v33, %v2593_v4  ;;  %v937_v48 = vsel %vm935_vm5, %v920_v40, %v2600_v16  ;;  %v785_v4 = vpack.c.b16 %v777_v44, %v697_v38 }
  0xa2   : > { %v922_v54 = vsel %vm918_vm4, %v905_v45, %v2607_v24  ;;  %v871_v33 = vsel %vm859_vm1, %v281_v31, %v2641_v12 }
  0xa3   : > { %v832_v1 = vshll.u32 %v785_v4, 16  ;;  %v830_v13 = vshrl.u32 %v785_v4, 16 }
  0xa5   : > { %505 = vrot.lane.b32.xlu0 %v490_v6, %s2394_s21  ;;  %543 = vrot.lane.b32.xlu1 %v529_v7, %s2393_s20  ;;  %v745_v7 = vpack.c.b16 %v737_v60, %v737_v60 }
  0xa7   : > { %v670_v19 = vpop.permute.xlu0 %669  ;;  %v708_v20 = vpop.permute.xlu1 %707  ;;  %545 = vrot.lane.b32.xlu2 %v530_v17, %s2393_s20  ;;  %v841_v17 = vrot.slane %v839_v11, 1  ;;  %s2401_s20 = smov 56  }
  0xa8   : > { %v954_v55 = vsel %vm952_vm6, %v937_v48, %v708_v20  ;;  %v939_v58 = vsel %vm935_vm5, %v922_v54, %v670_v19 }
  0xa9   : > { %v2654_v25 = vpop.permute.xlu2 %535  ;;  %v956_v24 = vsel %vm952_vm6, %v939_v58, %v2619_v39  ;;  %v834_v39 = vrot.slane %v832_v1, 1  ;;  %v842_v21 = vor.u32 %v841_v17, %v837_v15 }
  0xab   : > { %v835_v18 = vor.u32 %v834_v39, %v830_v13 }
  0xad   : > { %583 = vrot.lane.b32.xlu0 %v569_v26, %s2391_s18  ;;  %585 = vrot.lane.b32.xlu1 %v570_v27, %s2391_s18 }
  0xaf   : > { %v748_v46 = vpop.permute.xlu0 %747  ;;  %v750_v52 = vpop.permute.xlu1 %749  ;;  %679 = vrot.lane.b32.xlu2 %v659_v43, %s2395_s22 }
  0xb0   : > { %v971_v59 = vsel %vm969_vm7, %v954_v55, %v748_v46  ;;  %v973_v2 = vsel %vm969_vm7, %v956_v24, %v750_v52  ;;  %v282_v24 = vld [vmem:[%s2498_s17 + $0x20] sm:$0xf] }
  0xb1   : > { %v578_v16 = vpop.permute.xlu2 %577  ;;  %v988_v63 = vsel %vm986_vm8, %v971_v59, %v2631_v56 }
  0xb2   : > { %v1020_v8 = vunpack.c.l.b16 %v988_v63  ;;  %v283_v63 = vld [vmem:[%s2498_s17 + $0x28] sm:$0xf] }
  0xb5   : > { %681 = vrot.lane.b32.xlu0 %v666_v47, %s2395_s22  ;;  %719 = vrot.lane.b32.xlu1 %v705_v49, %s2396_s23  ;;  %s2402_s22 = smov 64  }
  0xb7   : > { %v846_v3 = vpop.permute.xlu0 %845  ;;  %v384_v5 = vpop.permute.xlu1 %383  ;;  %721 = vrot.lane.b32.xlu2 %v706_v0, %s2396_s23 }
  0xb8   : > { %v990_v6 = vsel %vm986_vm8, %v973_v2, %v846_v3  ;;  %v868_v32 = vsel %vm859_vm1, %v280_v30, %v384_v5  ;;  %v2399_v30 = vmov 0.0  }
  0xb9   : > { %v1021_v9 = vunpack.c.l.b16 %v990_v6  ;;  %v712_v56 = vpop.permute.xlu2 %711  ;;  %1117 = vst.msk [vmem:[#allocation2] sm:$0xff] %vm884_vm2, %v2399_v30 }
  0xba   : > { %1119 = vst.msk [vmem:[#allocation2 + $0x8] sm:$0x3] %vm1118_vm10, %v2399_v30 }
  0xbb   : > { %v1028_v14 = vpack.c.b16 %v1021_v9, %v1020_v8  ;;  %1121 = vst.msk [vmem:[#allocation2 + $0x90] sm:$0xff] %vm884_vm2, %v2399_v30 }
  0xbc   : > { %1122 = vst.msk [vmem:[#allocation2 + $0x98] sm:$0x3] %vm1118_vm10, %v2399_v30 }
  0xbd   : > { %759 = vrot.lane.b32.xlu0 %v745_v7, %s2397_s29  ;;  %761 = vrot.lane.b32.xlu1 %v746_v10, %s2397_s29  ;;  %s2264_s29 = sshll.u32 %s2466_s28, 6 }
  0xbe   : > { %2189 = vmatmul.msk.bf16.vlgmr.msra.gmra.mxu0 %vm1047_vm9, %v1028_v14 }
  0xbf   : > { %v496_v19 = vpop.permute.xlu0 %495  ;;  %v498_v20 = vpop.permute.xlu1 %497  ;;  %855 = vrot.lane.b32.xlu2 %v835_v18, %s2398_s8 }
  0xc0   : > { %v890_v34 = vsel %vm884_vm2, %v868_v32, %v496_v19  ;;  %v892_v35 = vsel %vm884_vm2, %v871_v33, %v498_v20 }
  0xc1   : > { %v754_v22 = vpop.permute.xlu2 %753  ;;  %v907_v41 = vsel %vm901_vm3, %v890_v34, %v2654_v25  ;;  %v1197_v34 = vld [vmem:[#allocation2 + $0x1] sm:$0xff] }
  0xc5   : > { %857 = vrot.lane.b32.xlu0 %v842_v21, %s2398_s8 }
  0xc7   : > { %v538_v23 = vpop.permute.xlu0 %537  ;;  %v576_v26 = vpop.permute.xlu1 %575 }
  0xc8   : > { %v909_v36 = vsel %vm901_vm3, %v892_v35, %v538_v23  ;;  %v924_v42 = vsel %vm918_vm4, %v907_v41, %v576_v26  ;;  %v1213_v35 = vld [vmem:[#allocation2 + $0x2] sm:$0xff] }
  0xc9   : > { %v388_v27 = vpop.permute.xlu2 %387  ;;  %v926_v43 = vsel %vm918_vm4, %v909_v36, %v578_v16  ;;  %v1205_v36 = vpack.c.bf16 %v1197_v34, %v1197_v34 }
  0xca   : > { %v874_v0 = vsel %vm859_vm1, %v282_v24, %v388_v27 }
  0xcf   : > { %v672_v28 = vpop.permute.xlu0 %671  ;;  %v674_v29 = vpop.permute.xlu1 %673 }
  0xd0   : > { %v941_v44 = vsel %vm935_vm5, %v924_v42, %v672_v28  ;;  %v943_v12 = vsel %vm935_vm5, %v926_v43, %v674_v29 }
  0xd1   : > { %v502_v40 = vpop.permute.xlu2 %501  ;;  %v958_v46 = vsel %vm952_vm6, %v941_v44, %v712_v56 }
  0xd7   : > { %v714_v37 = vpop.permute.xlu0 %713  ;;  %v752_v38 = vpop.permute.xlu1 %751 }
  0xd8   : > { %v960_v45 = vsel %vm952_vm6, %v943_v12, %v714_v37  ;;  %v975_v52 = vsel %vm969_vm7, %v958_v46, %v752_v38  ;;  %v1221_v37 = vpack.c.bf16 %v1213_v35, %v1213_v35  ;;  %v1334_v38 = vunpack.c.l.b16 %v1205_v36  ;;  %v1301_v46 = vld [vmem:[#allocation2 + $0x91] sm:$0xff] }
  0xd9   : > { %v977_v47 = vsel %vm969_vm7, %v960_v45, %v754_v22  ;;  %v580_v54 = vpop.permute.xlu2 %579  ;;  %v1285_v45 = vld [vmem:[#allocation2 + $0x90] sm:$0xff] }
  0xda   : > { %v1342_v44 = vpack.c.b16 %v1334_v38, %v1334_v38 }
  0xdc   : > { %1350 = vrot.lane.b32.xlu0 %v1342_v44, %s2394_s21 }
  0xdf   : > { %v848_v48 = vpop.permute.xlu0 %847  ;;  %v850_v49 = vpop.permute.xlu1 %849 }
  0xe0   : > { %v992_v25 = vsel %vm986_vm8, %v975_v52, %v848_v48  ;;  %v994_v50 = vsel %vm986_vm8, %v977_v47, %v850_v49  ;;  %v1317_v52 = vld [vmem:[#allocation2 + $0x92] sm:$0xff]  ;;  %v1293_v47 = vpack.c.bf16 %v1285_v45, %v1285_v45  ;;  %v1309_v48 = vpack.c.bf16 %v1301_v46, %v1301_v46 }
  0xe1   : > { %v1022_v51 = vunpack.c.l.b16 %v992_v25  ;;  %v1023_v53 = vunpack.c.l.b16 %v994_v50  ;;  %v678_v58 = vpop.permute.xlu2 %677  ;;  %v1325_v49 = vpack.c.bf16 %v1317_v52, %v1317_v52  ;;  %v284_v25 = vld [vmem:[%s2498_s17 + $0x30] sm:$0xf] }
  0xe3   : > { %v1029_v55 = vpack.c.b16 %v1023_v53, %v1022_v51  ;;  %v1541_v51 = vunpack.c.l.b16 %v1293_v47  ;;  %v1581_v53 = vunpack.c.l.b16 %v1309_v48 }
  0xe5   : > { %2190 = vmatmul.msk.bf16.gmra.mxu0 %vm1047_vm9, %v1029_v55  ;;  %v285_v55 = vld [vmem:[%s2498_s17 + $0x38] sm:$0xf] }
  0xe7   : > { %v390_v57 = vpop.permute.xlu0 %389  ;;  %v500_v4 = vpop.permute.xlu1 %499 }
  0xe8   : > { %v877_v1 = vsel %vm859_vm1, %v283_v63, %v390_v57  ;;  %v894_v2 = vsel %vm884_vm2, %v874_v0, %v500_v4 }
  0xe9   : > { %v756_v16 = vpop.permute.xlu2 %755  ;;  %v896_v7 = vsel %vm884_vm2, %v877_v1, %v502_v40  ;;  %v1374_v40 = vunpack.c.l.b16 %v1221_v37 }
  0xeb   : > { %v1382_v12 = vpack.c.b16 %v1374_v40, %v1374_v40 }
  0xed   : > { %1390 = vrot.lane.b32.xlu1 %v1382_v12, %s2391_s18 }
  0xef   : > { %v540_v59 = vpop.permute.xlu0 %539  ;;  %v542_v60 = vpop.permute.xlu1 %541 }
  0xf0   : > { %v911_v3 = vsel %vm901_vm3, %v894_v2, %v540_v59  ;;  %v913_v9 = vsel %vm901_vm3, %v896_v7, %v542_v60  ;;  %v1589_v59 = vpack.c.b16 %v1581_v53, %v1581_v53 }
  0xf1   : > { %v854_v8 = vpop.permute.xlu2 %853  ;;  %v928_v10 = vsel %vm918_vm4, %v911_v3, %v580_v54  ;;  %v1621_v54 = vunpack.c.l.b16 %v1325_v49 }
  0xf2   : > { %1604 = vrot.lane.b32.xlu0 %v1589_v59, %s2401_s20 }
  0xf3   : > { %v1629_v60 = vpack.c.b16 %v1621_v54, %v1621_v54 }
  0xf5   : > { %1644 = vrot.lane.b32.xlu1 %v1629_v60, %s2402_s22 }
  0xf7   : > { %v582_v61 = vpop.permute.xlu0 %581  ;;  %v676_v62 = vpop.permute.xlu1 %675 }
  0xf8   : > { %v930_v11 = vsel %vm918_vm4, %v913_v9, %v582_v61  ;;  %v945_v13 = vsel %vm935_vm5, %v928_v10, %v676_v62 }
  0xf9   : > { %v947_v14 = vsel %vm935_vm5, %v930_v11, %v678_v58  ;;  %v504_v26 = vpop.permute.xlu2 %503  ;;  %v1549_v58 = vpack.c.b16 %v1541_v51, %v1541_v51 }
  0xfb   : > { %1564 = vrot.lane.b32.xlu2 %v1549_v58, %s2400_s19 }
  0xff   : > { %v716_v5 = vpop.permute.xlu0 %715  ;;  %v718_v6 = vpop.permute.xlu1 %717 }
 0x100   : > { %v962_v39 = vsel %vm952_vm6, %v945_v13, %v716_v5  ;;  %v964_v56 = vsel %vm952_vm6, %v947_v14, %v718_v6 }
 0x101   : > { %v979_v15 = vsel %vm969_vm7, %v962_v39, %v756_v16  ;;  %v546_v31 = vpop.permute.xlu2 %545 }
 0x107   : > { %v758_v17 = vpop.permute.xlu0 %757  ;;  %v852_v18 = vpop.permute.xlu1 %851 }
 0x108   : > { %v981_v19 = vsel %vm969_vm7, %v964_v56, %v758_v17  ;;  %v996_v20 = vsel %vm986_vm8, %v979_v15, %v852_v18  ;;  %v2760_v15 = vld [vmem:[%s3121_s2] ss:$0 sm:$0xff] }
 0x109   : > { %v1024_v21 = vunpack.c.l.b16 %v996_v20  ;;  %v998_v22 = vsel %vm986_vm8, %v981_v19, %v854_v8  ;;  %v680_v42 = vpop.permute.xlu2 %679 }
 0x10a   : > { %v1025_v23 = vunpack.c.l.b16 %v998_v22 }
 0x10c   : > { %v1030_v27 = vpack.c.b16 %v1025_v23, %v1024_v21 }
 0x10e   : > { %2191 = vmatmul.msk.bf16.gmra.mxu0 %vm1047_vm9, %v1030_v27 }
 0x10f   : > { %v392_v28 = vpop.permute.xlu0 %391  ;;  %v394_v29 = vpop.permute.xlu1 %393 }
 0x110   : > { %v880_v57 = vsel %vm859_vm1, %v284_v25, %v392_v28  ;;  %v883_v61 = vsel %vm859_vm1, %v285_v55, %v394_v29 }
 0x111   : > { %v722_v4 = vpop.permute.xlu2 %721  ;;  %v898_v62 = vsel %vm884_vm2, %v880_v57, %v504_v26 }
 0x117   : > { %v506_v32 = vpop.permute.xlu0 %505  ;;  %v544_v33 = vpop.permute.xlu1 %543 }
 0x118   : > { %v915_v24 = vsel %vm901_vm3, %v898_v62, %v544_v33  ;;  %v900_v63 = vsel %vm884_vm2, %v883_v61, %v506_v32 }
 0x119   : > { %v917_v2 = vsel %vm901_vm3, %v900_v63, %v546_v31  ;;  %v856_v9 = vpop.permute.xlu2 %855 }
 0x11f   : > { %v584_v41 = vpop.permute.xlu0 %583  ;;  %v586_v43 = vpop.permute.xlu1 %585 }
 0x120   : > { %v932_v0 = vsel %vm918_vm4, %v915_v24, %v584_v41  ;;  %v934_v5 = vsel %vm918_vm4, %v917_v2, %v586_v43 }
 0x121   : > { %v949_v3 = vsel %vm935_vm5, %v932_v0, %v680_v42 }
 0x127   : > { %v682_v50 = vpop.permute.xlu0 %681  ;;  %v720_v16 = vpop.permute.xlu1 %719 }
 0x128   : > { %v966_v6 = vsel %vm952_vm6, %v949_v3, %v720_v16  ;;  %v951_v7 = vsel %vm935_vm5, %v934_v5, %v682_v50 }
 0x129   : > { %v968_v11 = vsel %vm952_vm6, %v951_v7, %v722_v4 }
 0x12f   : > { %v760_v1 = vpop.permute.xlu0 %759  ;;  %v762_v10 = vpop.permute.xlu1 %761 }
 0x130   : > { %v983_v8 = vsel %vm969_vm7, %v966_v6, %v760_v1  ;;  %v985_v39 = vsel %vm969_vm7, %v968_v11, %v762_v10 }
 0x131   : > { %v1000_v13 = vsel %vm986_vm8, %v983_v8, %v856_v9 }
 0x132   : > { %v1026_v17 = vunpack.c.l.b16 %v1000_v13 }
 0x137   : > { %v858_v14 = vpop.permute.xlu0 %857 }
 0x138   : > { %v1002_v56 = vsel %vm986_vm8, %v985_v39, %v858_v14 }
 0x139   : > { %v1027_v18 = vunpack.c.l.b16 %v1002_v56 }
 0x13b   : > { %v1073_v19 = vpop.f32.mrf.mxu0  ;;  %v1031_v20 = vpack.c.b16 %v1027_v18, %v1026_v17 }
 0x13c   : > { %v1074_v21 = vadd.f32 %v2760_v15, %v1073_v19 }
 0x13d   : > { %2192 = vmatmul.msk.bf16.gmra.mxu0 %vm1047_vm9, %v1031_v20 }
 0x13e   : > { %vm1093_vm11 = vcmp.ge.f32.partialorder %v1074_v21, 0.0  ;;  %v1101_v22 = vmul.f32 0.01, %v1074_v21 }
 0x140   : > { %v1109_v23 = vsel %vm1093_vm11, %v1074_v21, %v1101_v22  ;;  %vm1718_vm11 = vcmask 326656  }
 0x141   : > { %v1131_v26 = vrot.slane %v1109_v23, 7 }
 0x143   : > { %v1148_v27 = vsel %vm1147_vm12, 0.0, %v1131_v26  ;;  %v1156_v28 = vsel %vm1147_vm12, %v1131_v26, 0.0  ;;  %v1075_v29 = vpop.f32.mrf.mxu0 }
 0x144   : > { %1165 = vst.msk [vmem:[#allocation2 + $0x10] sm:$0xff] %vm884_vm2, %v1148_v27  ;;  %v1076_v30 = vadd.f32 %v2760_v15, %v1075_v29 }
 0x145   : > { %1166 = vst.msk [vmem:[#allocation2 + $0x18] sm:$0x3] %vm1118_vm10, %v1156_v28 }
 0x146   : > { %vm1094_vm13 = vcmp.ge.f32.partialorder %v1076_v30, 0.0  ;;  %v1102_v31 = vmul.f32 0.01, %v1076_v30 }
 0x148   : > { %v1110_v32 = vsel %vm1094_vm13, %v1076_v30, %v1102_v31  ;;  %vm1859_vm13 = vcmask 1043456  }
 0x149   : > { %v1132_v33 = vrot.slane %v1110_v32, 7 }
 0x14b   : > { %v1149_v34 = vsel %vm1147_vm12, 0.0, %v1132_v33  ;;  %v1157_v35 = vsel %vm1147_vm12, %v1132_v33, 0.0  ;;  %v1229_v41 = vld [vmem:[#allocation2 + $0x10] sm:$0xff] }
 0x14c   : > { %1167 = vst.msk [vmem:[#allocation2 + $0x20] sm:$0xff] %vm884_vm2, %v1149_v34  ;;  %v1261_v36 = vld [vmem:[#allocation2 + $0x12] sm:$0xff]  ;;  %v2773_v45 = vpack.c.bf16 %v1229_v41, %v1229_v41 }
 0x14d   : > { %v1198_v37 = vld [vmem:[#allocation2 + $0x11] sm:$0xff]  ;;  %1168 = vst.msk [vmem:[#allocation2 + $0x28] sm:$0x3] %vm1118_vm10, %v1157_v35  ;;  %v1269_v38 = vpack.c.bf16 %v1261_v36, %v1261_v36 }
 0x14e   : > { %v1206_v40 = vpack.c.bf16 %v1198_v37, %v1198_v37  ;;  %v1414_v47 = vunpack.c.l.b16 %v2773_v45 }
 0x14f   : > { %v1494_v42 = vunpack.c.l.b16 %v1269_v38  ;;  %v1181_v38 = vld [vmem:[#allocation2] sm:$0xff] }
 0x150   : > { %v1335_v43 = vunpack.c.l.b16 %v1206_v40  ;;  %v1422_v51 = vpack.c.b16 %v1414_v47, %v1414_v47 }
 0x151   : > { %v1502_v44 = vpack.c.b16 %v1494_v42, %v1494_v42  ;;  %v1189_v42 = vpack.c.bf16 %v1181_v38, %v1181_v38 }
 0x152   : > { %v1343_v12 = vpack.c.b16 %v1335_v43, %v1335_v43 }
 0x153   : > { %1510 = vrot.lane.b32.xlu0 %v1502_v44, %s2403_s14  ;;  %1392 = vrot.lane.b32.xlu2 %v1502_v44, %s2391_s18  ;;  %v1230_v48 = vld [vmem:[#allocation2 + $0x20] sm:$0xff] }
 0x154   : > { %1352 = vrot.lane.b32.xlu1 %v1343_v12, %s2394_s21  ;;  %v1215_v46 = vld [vmem:[#allocation2 + $0x22] sm:$0xff]  ;;  %v2781_v53 = vpack.c.bf16 %v1230_v48, %v1230_v48 }
 0x155   : > { %v1223_v52 = vpack.c.bf16 %v1215_v46, %v1215_v46  ;;  %v1246_v49 = vld [vmem:[#allocation2 + $0x21] sm:$0xff] }
 0x156   : > { %v1254_v54 = vpack.c.bf16 %v1246_v49, %v1246_v49  ;;  %v1415_v55 = vunpack.c.l.b16 %v2781_v53 }
 0x157   : > { %v1376_v25 = vunpack.c.l.b16 %v1223_v52  ;;  %v1351_v52 = vpop.permute.xlu0 %1350 }
 0x158   : > { %v1455_v57 = vunpack.c.l.b16 %v1254_v54  ;;  %v1423_v4 = vpack.c.b16 %v1415_v55, %v1415_v55  ;;  %v1648_v48 = vsel %vm884_vm2, %v1189_v42, %v1351_v52 }
 0x159   : > { %v2779_v50 = vpack.c.b16 %v1376_v25, %v1376_v25 }
 0x15a   : > { %v1463_v58 = vpack.c.b16 %v1455_v57, %v1455_v57 }
 0x15b   : > { %1394 = vrot.lane.b32.xlu0 %v2779_v50, %s2391_s18  ;;  %1430 = vrot.lane.b32.xlu2 %v1422_v51, %s2396_s23 }
 0x15c   : > { %1470 = vrot.lane.b32.xlu1 %v1343_v12, %s2398_s8 }
 0x15f   : > { %v1391_v47 = vpop.permute.xlu1 %1390 }
 0x160   : > { %v1671_v25 = vsel %vm918_vm4, %v1648_v48, %v1391_v47 }
 0x162   : > { %v1078_v59 = vpop.f32.mrf.mxu0 }
 0x163   : > { %1432 = vrot.lane.b32.xlu0 %v1423_v4, %s2396_s23  ;;  %1472 = vrot.lane.b32.xlu2 %v1463_v58, %s2398_s8  ;;  %v1079_v60 = vadd.f32 %v2760_v15, %v1078_v59 }
 0x164   : > { %1354 = vrot.lane.b32.xlu1 %v1463_v58, %s2394_s21 }
 0x165   : > { %vm1095_vm14 = vcmp.ge.f32.partialorder %v1079_v60, 0.0  ;;  %v1103_v16 = vmul.f32 0.01, %v1079_v60 }
 0x167   : > { %v1111_v61 = vsel %vm1095_vm14, %v1079_v60, %v1103_v16  ;;  %vm1846_vm14 = vcmask 588800  }
 0x168   : > { %v1133_v62 = vrot.slane %v1111_v61, 7 }
 0x16a   : > { %v1150_v24 = vsel %vm1147_vm12, 0.0, %v1133_v62  ;;  %v1158_v63 = vsel %vm1147_vm12, %v1133_v62, 0.0  ;;  %v1080_v0 = vpop.f32.mrf.mxu0 }
 0x16b   : > { %1169 = vst.msk [vmem:[#allocation2 + $0x30] sm:$0xff] %vm884_vm2, %v1150_v24  ;;  %1550 = vrot.lane.b32.xlu2 %v1423_v4, %s2400_s19  ;;  %v1081_v1 = vadd.f32 %v2760_v15, %v1080_v0 }
 0x16c   : > { %1170 = vst.msk [vmem:[#allocation2 + $0x38] sm:$0x3] %vm1118_vm10, %v1158_v63  ;;  %1512 = vrot.lane.b32.xlu1 %v2779_v50, %s2403_s14 }
 0x16d   : > { %vm1096_vm15 = vcmp.ge.f32.partialorder %v1081_v1, 0.0  ;;  %v1104_v2 = vmul.f32 0.01, %v1081_v1 }
 0x16f   : > { %v1112_v3 = vsel %vm1096_vm15, %v1081_v1, %v1104_v2 }
 0x170   : > { %v1134_v5 = vrot.slane %v1112_v3, 7  ;;  %v2850_v3 = vpop.permute.xlu2 %1564 }
 0x172   : > { %v1151_v6 = vsel %vm1147_vm12, 0.0, %v1134_v5  ;;  %v1159_v7 = vsel %vm1147_vm12, %v1134_v5, 0.0  ;;  %v1279_v13 = vld [vmem:[#allocation2 + $0x30] sm:$0xff] }
 0x173   : > { %1171 = vst.msk [vmem:[#allocation2 + $0x40] sm:$0xff] %vm884_vm2, %v1151_v6  ;;  %v1263_v8 = vld [vmem:[#allocation2 + $0x32] sm:$0xff]  ;;  %v2809_v18 = vpack.c.bf16 %v1279_v13, %v1279_v13 }
 0x174   : > { %v1200_v9 = vld [vmem:[#allocation2 + $0x31] sm:$0xff]  ;;  %1172 = vst.msk [vmem:[#allocation2 + $0x48] sm:$0x3] %vm1118_vm10, %v1159_v7  ;;  %1590 = vrot.lane.b32.xlu1 %v1463_v58, %s2401_s20  ;;  %v1271_v10 = vpack.c.bf16 %v1263_v8, %v1263_v8 }
 0x175   : > { %v1208_v11 = vpack.c.bf16 %v1200_v9, %v1200_v9  ;;  %v1535_v19 = vunpack.c.l.b16 %v2809_v18 }
 0x176   : > { %v1496_v39 = vunpack.c.l.b16 %v1271_v10 }
 0x177   : > { %v1337_v14 = vunpack.c.l.b16 %v1208_v11  ;;  %v1543_v23 = vpack.c.b16 %v1535_v19, %v1535_v19 }
 0x178   : > { %v2805_v56 = vpack.c.b16 %v1496_v39, %v1496_v39 }
 0x179   : > { %v2807_v17 = vpack.c.b16 %v1337_v14, %v1337_v14 }
 0x17a   : > { %1514 = vrot.lane.b32.xlu0 %v2805_v56, %s2403_s14  ;;  %v1232_v20 = vld [vmem:[#allocation2 + $0x40] sm:$0xff] }
 0x17b   : > { %1356 = vrot.lane.b32.xlu2 %v2807_v17, %s2394_s21  ;;  %v1248_v21 = vld [vmem:[#allocation2 + $0x41] sm:$0xff]  ;;  %v2818_v26 = vpack.c.bf16 %v1232_v20, %v1232_v20 }
 0x17c   : > { %1396 = vrot.lane.b32.xlu1 %v2805_v56, %s2391_s18  ;;  %v1264_v22 = vld [vmem:[#allocation2 + $0x42] sm:$0xff]  ;;  %v1256_v27 = vpack.c.bf16 %v1248_v21, %v1248_v21 }
 0x17d   : > { %v1272_v28 = vpack.c.bf16 %v1264_v22, %v1264_v22  ;;  %v1417_v29 = vunpack.c.l.b16 %v2818_v26 }
 0x17e   : > { %v1457_v30 = vunpack.c.l.b16 %v1256_v27 }
 0x17f   : > { %v1497_v31 = vunpack.c.l.b16 %v1272_v28  ;;  %v1425_v32 = vpack.c.b16 %v1417_v29, %v1417_v29  ;;  %v2866_v29 = vpop.permute.xlu0 %1604 }
 0x180   : > { %v1465_v33 = vpack.c.b16 %v1457_v30, %v1457_v30  ;;  %v2869_v30 = vpop.permute.xlu1 %1644 }
 0x181   : > { %v1505_v34 = vpack.c.b16 %v1497_v31, %v1497_v31 }
 0x182   : > { %1552 = vrot.lane.b32.xlu0 %v1543_v23, %s2400_s19 }
 0x183   : > { %1434 = vrot.lane.b32.xlu2 %v1543_v23, %s2396_s23 }
 0x184   : > { %1474 = vrot.lane.b32.xlu1 %v2807_v17, %s2398_s8 }
 0x18a   : > { %1436 = vrot.lane.b32.xlu0 %v1425_v32, %s2396_s23 }
 0x18b   : > { %1476 = vrot.lane.b32.xlu2 %v1465_v33, %s2398_s8  ;;  %v1083_v35 = vpop.f32.mrf.mxu0 }
 0x18c   : > { %1516 = vrot.lane.b32.xlu1 %v1505_v34, %s2403_s14  ;;  %v1084_v36 = vadd.f32 %v2760_v15, %v1083_v35 }
 0x18e   : > { %vm1097_vm3 = vcmp.ge.f32.partialorder %v1084_v36, 0.0  ;;  %v1105_v37 = vmul.f32 0.01, %v1084_v36 }
 0x190   : > { %v1113_v40 = vsel %vm1097_vm3, %v1084_v36, %v1105_v37 }
 0x191   : > { %v1135_v41 = vrot.slane %v1113_v40, 7 }
 0x192   : > { %1634 = vrot.lane.b32.xlu0 %v1505_v34, %s2402_s22 }
 0x193   : > { %1554 = vrot.lane.b32.xlu2 %v1425_v32, %s2400_s19  ;;  %v1152_v43 = vsel %vm1147_vm12, 0.0, %v1135_v41  ;;  %v1160_v44 = vsel %vm1147_vm12, %v1135_v41, 0.0  ;;  %v1085_v12 = vpop.f32.mrf.mxu0 }
 0x194   : > { %1173 = vst.msk [vmem:[#allocation2 + $0x50] sm:$0xff] %vm884_vm2, %v1152_v43  ;;  %1594 = vrot.lane.b32.xlu1 %v1465_v33, %s2401_s20  ;;  %v1086_v46 = vadd.f32 %v2760_v15, %v1085_v12 }
 0x195   : > { %1174 = vst.msk [vmem:[#allocation2 + $0x58] sm:$0x3] %vm1118_vm10, %v1160_v44 }
 0x196   : > { %vm1098_vm5 = vcmp.ge.f32.partialorder %v1086_v46, 0.0  ;;  %v1106_v49 = vmul.f32 0.01, %v1086_v46 }
 0x198   : > { %v1114_v51 = vsel %vm1098_vm5, %v1086_v46, %v1106_v49 }
 0x199   : > { %v1136_v54 = vrot.slane %v1114_v51, 7 }
 0x19b   : > { %1358 = vrot.lane.b32.xlu2 %v1465_v33, %s2394_s21  ;;  %v1153_v55 = vsel %vm1147_vm12, 0.0, %v1136_v54  ;;  %v1161_v57 = vsel %vm1147_vm12, %v1136_v54, 0.0  ;;  %v1281_v4 = vld [vmem:[#allocation2 + $0x50] sm:$0xff] }
 0x19c   : > { %1175 = vst.msk [vmem:[#allocation2 + $0x60] sm:$0xff] %vm884_vm2, %v1153_v55  ;;  %1398 = vrot.lane.b32.xlu1 %v1505_v34, %s2391_s18  ;;  %v2844_v58 = vpack.c.bf16 %v1281_v4, %v1281_v4  ;;  %v1297_v59 = vld [vmem:[#allocation2 + $0x51] sm:$0xff] }
 0x19d   : > { %v1313_v60 = vld [vmem:[#allocation2 + $0x52] sm:$0xff]  ;;  %1176 = vst.msk [vmem:[#allocation2 + $0x68] sm:$0x3] %vm1118_vm10, %v1161_v57  ;;  %v1305_v16 = vpack.c.bf16 %v1297_v59, %v1297_v59 }
 0x19e   : > { %v1321_v61 = vpack.c.bf16 %v1313_v60, %v1313_v60  ;;  %v1537_v62 = vunpack.c.l.b16 %v2844_v58 }
 0x19f   : > { %v1577_v24 = vunpack.c.l.b16 %v1305_v16 }
 0x1a0   : > { %v1617_v63 = vunpack.c.l.b16 %v1321_v61  ;;  %v1545_v0 = vpack.c.b16 %v1537_v62, %v1537_v62 }
 0x1a1   : > { %v1585_v1 = vpack.c.b16 %v1577_v24, %v1577_v24 }
 0x1a2   : > { %v1625_v2 = vpack.c.b16 %v1617_v63, %v1617_v63  ;;  %1556 = vrot.lane.b32.xlu0 %v1545_v0, %s2400_s19 }
 0x1a3   : > { %1596 = vrot.lane.b32.xlu2 %v1585_v1, %s2401_s20  ;;  %v1234_v5 = vld [vmem:[#allocation2 + $0x60] sm:$0xff] }
 0x1a4   : > { %1636 = vrot.lane.b32.xlu1 %v1625_v2, %s2402_s22  ;;  %v2854_v6 = vpack.c.bf16 %v1234_v5, %v1234_v5  ;;  %v1250_v8 = vld [vmem:[#allocation2 + $0x61] sm:$0xff] }
 0x1a5   : > { %v1266_v10 = vld [vmem:[#allocation2 + $0x62] sm:$0xff]  ;;  %v1258_v11 = vpack.c.bf16 %v1250_v8, %v1250_v8 }
 0x1a6   : > { %v1419_v9 = vunpack.c.l.b16 %v2854_v6  ;;  %v1274_v13 = vpack.c.bf16 %v1266_v10, %v1266_v10 }
 0x1a7   : > { %v1459_v14 = vunpack.c.l.b16 %v1258_v11 }
 0x1a8   : > { %v1427_v39 = vpack.c.b16 %v1419_v9, %v1419_v9  ;;  %v1499_v20 = vunpack.c.l.b16 %v1274_v13 }
 0x1a9   : > { %v1467_v22 = vpack.c.b16 %v1459_v14, %v1459_v14 }
 0x1aa   : > { %1360 = vrot.lane.b32.xlu0 %v1585_v1, %s2394_s21  ;;  %v1507_v23 = vpack.c.b16 %v1499_v20, %v1499_v20 }
 0x1ab   : > { %1400 = vrot.lane.b32.xlu2 %v1625_v2, %s2391_s18 }
 0x1ac   : > { %1518 = vrot.lane.b32.xlu1 %v1625_v2, %s2403_s14 }
 0x1ad   : > { %v1393_v7 = vpop.permute.xlu2 %1392 }
 0x1b2   : > { %1438 = vrot.lane.b32.xlu0 %v1545_v0, %s2396_s23 }
 0x1b3   : > { %1478 = vrot.lane.b32.xlu2 %v1585_v1, %s2398_s8 }
 0x1b4   : > { %1440 = vrot.lane.b32.xlu1 %v1427_v39, %s2396_s23 }
 0x1b5   : > { %v1431_v19 = vpop.permute.xlu2 %1430 }
 0x1b6   : > { %v1687_v21 = vsel %vm952_vm6, %v1671_v25, %v1431_v19 }
 0x1ba   : > { %v1088_v27 = vpop.f32.mrf.mxu0  ;;  %1480 = vrot.lane.b32.xlu0 %v1467_v22, %s2398_s8 }
 0x1bb   : > { %v1089_v28 = vadd.f32 %v2760_v15, %v1088_v27  ;;  %1520 = vrot.lane.b32.xlu2 %v1507_v23, %s2403_s14 }
 0x1bc   : > { %1638 = vrot.lane.b32.xlu1 %v1507_v23, %s2402_s22 }
 0x1bd   : > { %vm1099_vm7 = vcmp.ge.f32.partialorder %v1089_v28, 0.0  ;;  %v1107_v31 = vmul.f32 0.01, %v1089_v28  ;;  %v1473_v36 = vpop.permute.xlu2 %1472 }
 0x1bf   : > { %v1115_v32 = vsel %vm1099_vm7, %v1089_v28, %v1107_v31 }
 0x1c0   : > { %v1137_v33 = vrot.slane %v1115_v32, 7 }
 0x1c2   : > { %v1154_v34 = vsel %vm1147_vm12, 0.0, %v1137_v33  ;;  %v1162_v35 = vsel %vm1147_vm12, %v1137_v33, 0.0  ;;  %v1090_v37 = vpop.f32.mrf.mxu0  ;;  %1558 = vrot.lane.b32.xlu0 %v1427_v39, %s2400_s19  ;;  %v1794_v33 = vld [vmem:[%s3122_s3 + $0x20] sm:$0xf] }
 0x1c3   : > { %1177 = vst.msk [vmem:[#allocation2 + $0x70] sm:$0xff] %vm884_vm2, %v1154_v34  ;;  %v1091_v38 = vadd.f32 %v2760_v15, %v1090_v37  ;;  %1598 = vrot.lane.b32.xlu2 %v1467_v22, %s2401_s20 }
 0x1c4   : > { %1178 = vst.msk [vmem:[#allocation2 + $0x78] sm:$0x3] %vm1118_vm10, %v1162_v35 }
 0x1c5   : > { %vm1100_vm9 = vcmp.ge.f32.partialorder %v1091_v38, 0.0  ;;  %v1108_v40 = vmul.f32 0.01, %v1091_v38  ;;  %v1511_v41 = vpop.permute.xlu0 %1510 }
 0x1c6   : > { %v1353_v42 = vpop.permute.xlu1 %1352 }
 0x1c7   : > { %v1116_v43 = vsel %vm1100_vm9, %v1091_v38, %v1108_v40  ;;  %v1651_v44 = vsel %vm884_vm2, %v2773_v45, %v1353_v42  ;;  %v1551_v45 = vpop.permute.xlu2 %1550  ;;  %v1900_v40 = vld [vmem:[%s3124_s5] sm:$0x3] }
 0x1c8   : > { %v1138_v12 = vrot.slane %v1116_v43, 7  ;;  %v1673_v46 = vsel %vm918_vm4, %v1651_v44, %v1393_v7  ;;  %v2223_v44 = vld [vmem:[%s2498_s17 + $0xd8] sm:$0xf] }
 0x1ca   : > { %v1155_v52 = vsel %vm1147_vm12, 0.0, %v1138_v12  ;;  %v1163_v47 = vsel %vm1147_vm12, %v1138_v12, 0.0  ;;  %1362 = vrot.lane.b32.xlu0 %v1467_v22, %s2394_s21  ;;  %v1283_v15 = vld [vmem:[#allocation2 + $0x70] sm:$0xff]  ;;  %vm1735_vm12 = vcmask 392192   ;;  %v2260_v12 = vld [vmem:[%s2498_s17 + $0xdc] sm:$0xf0] }
 0x1cb   : > { %1179 = vst.msk [vmem:[#allocation2 + $0x80] sm:$0xff] %vm884_vm2, %v1155_v52  ;;  %1402 = vrot.lane.b32.xlu2 %v1507_v23, %s2391_s18  ;;  %v2886_v48 = vpack.c.bf16 %v1283_v15, %v1283_v15  ;;  %v1299_v49 = vld [vmem:[#allocation2 + $0x71] sm:$0xff] }
 0x1cc   : > { %v1315_v25 = vld [vmem:[#allocation2 + $0x72] sm:$0xff]  ;;  %1180 = vst.msk [vmem:[#allocation2 + $0x88] sm:$0x3] %vm1118_vm10, %v1163_v47  ;;  %v1307_v51 = vpack.c.bf16 %v1299_v49, %v1299_v49  ;;  %vm1752_vm10 = vcmask 457728  }
 0x1cd   : > { %v1323_v54 = vpack.c.bf16 %v1315_v25, %v1315_v25  ;;  %v2889_v55 = vpop.permute.xlu0 %1394  ;;  %v1539_v57 = vunpack.c.l.b16 %v2886_v48  ;;  %v2259_v47 = vld [vmem:[%s3122_s3 + $0x18] sm:$0xff]  ;;  %v2258_v49 = vld [vmem:[%s3122_s3 + $0x10] sm:$0xff] }
 0x1ce   : > { %v1471_v4 = vpop.permute.xlu1 %1470  ;;  %v1579_v59 = vunpack.c.l.b16 %v1307_v51 }
 0x1cf   : > { %v1619_v60 = vunpack.c.l.b16 %v1323_v54  ;;  %v1703_v16 = vsel %vm986_vm8, %v1687_v21, %v1471_v4  ;;  %v1547_v61 = vpack.c.b16 %v1539_v57, %v1539_v57  ;;  %v2257_v54 = vld [vmem:[%s3122_s3 + $0x8] sm:$0xff]  ;;  %v2256_v57 = vld [vmem:[%s3122_s3] sm:$0xff] }
 0x1d0   : > { %v1720_v62 = vsel %vm1718_vm11, %v1703_v16, %v1511_v41  ;;  %v1587_v24 = vpack.c.b16 %v1579_v59, %v1579_v59  ;;  %v1938_v41 = vsel %vm1060_vm0, %v1900_v40, 0  ;;  %v2227_v4 = vld [vmem:[%s2498_s17 + $0xe8] sm:$0xf]  ;;  %v2261_v59 = vld [vmem:[%s2498_s17 + $0xec] sm:$0xf0]  ;;  %vm1769_vm0 = vcmask 523264  }
 0x1d1   : > { %v1627_v63 = vpack.c.b16 %v1619_v60, %v1619_v60  ;;  %1560 = vrot.lane.b32.xlu1 %v1547_v61, %s2400_s19  ;;  %v1737_v0 = vsel %vm1735_vm12, %v1720_v62, %v1551_v45  ;;  %1947 = vmatpush.bf16.msra.mxu2 %v1938_v41  ;;  %v2228_v60 = vor.u32 %v2261_v59, %v2227_v4 }
 0x1d2   : > { %1600 = vrot.lane.b32.xlu0 %v1587_v24, %s2401_s20  ;;  %v1236_v8 = vld [vmem:[#allocation2 + $0x80] sm:$0xff] }
 0x1d3   : > { %1640 = vrot.lane.b32.xlu2 %v1627_v63, %s2402_s22  ;;  %v1244_v10 = vpack.c.bf16 %v1236_v8, %v1236_v8  ;;  %v1252_v13 = vld [vmem:[#allocation2 + $0x81] sm:$0xff] }
 0x1d4   : > { %v1268_v14 = vld [vmem:[#allocation2 + $0x82] sm:$0xff]  ;;  %v1260_v21 = vpack.c.bf16 %v1252_v13, %v1252_v13 }
 0x1d5   : > { %v2898_v1 = vpop.permute.xlu2 %1356  ;;  %v1433_v2 = vpop.permute.xlu0 %1432  ;;  %v1421_v39 = vunpack.c.l.b16 %v1244_v10  ;;  %v1276_v22 = vpack.c.bf16 %v1268_v14, %v1268_v14 }
 0x1d6   : > { %v1689_v5 = vsel %vm952_vm6, %v1673_v46, %v1433_v2  ;;  %v2901_v7 = vpop.permute.xlu1 %1354  ;;  %v1461_v27 = vunpack.c.l.b16 %v1260_v21  ;;  %v2224_v46 = vor.u32 %v2260_v12, %v2223_v44  ;;  %v1657_v2 = vsel %vm884_vm2, %v2809_v18, %v2898_v1 }
 0x1d7   : > { %v1705_v9 = vsel %vm986_vm8, %v1689_v5, %v1473_v36  ;;  %v1429_v23 = vpack.c.b16 %v1421_v39, %v1421_v39  ;;  %v1501_v28 = vunpack.c.l.b16 %v1276_v22  ;;  %v1836_v36 = vunpack.c.l.b16 %v1794_v33 }
 0x1d8   : > { %v1469_v35 = vpack.c.b16 %v1461_v27, %v1461_v27  ;;  %2237 = vmatmul.msk.bf16.vlgmr.msra.gmra.mxu2 %vm859_vm1, %v2224_v46 }
 0x1d9   : > { %1364 = vrot.lane.b32.xlu1 %v1587_v24, %s2394_s21  ;;  %v1509_v37 = vpack.c.b16 %v1501_v28, %v1501_v28  ;;  %v1841_v38 = vpack.c.b16 %v1836_v36, %v1836_v36  ;;  %v2231_v36 = vld [vmem:[%s2498_s17 + $0xf8] sm:$0xf] }
 0x1da   : > { %1404 = vrot.lane.b32.xlu0 %v1627_v63, %s2391_s18  ;;  %s2021_s18 = scalar_lea.hbm %s3126_s7, %s2264_s29 }
 0x1db   : > { %1522 = vrot.lane.b32.xlu2 %v1627_v63, %s2403_s14  ;;  %v1861_v42 = vsel %vm1859_vm13, %v1841_v38, 0  ;;  %s2024_s15 = sshll.u32 %s2021_s18, 4  ;;  %s2025_s15 = int_to_ptr.hbm [resolvable:$true] %s2024_s15 }
 0x1dc   : > { %2265 = vmatpush.bf16.msra.mxu3 %v1861_v42  ;;  %1866 = vmatpush.bf16.msra.mxu1 %v1861_v42 }
 0x1dd   : > { %v2907_v11 = vpop.permute.xlu2 %1434 }
 0x1de   : > { %v1513_v19 = vpop.permute.xlu1 %1512 }
 0x1df   : > { %v1722_v20 = vsel %vm1718_vm11, %v1705_v9, %v1513_v19 }
 0x1e0   : > { %2266 = vmatpush.bf16.msra.mxu3 %v2259_v47  ;;  %1867 = vmatpush.bf16.msra.mxu1 %v2259_v47 }
 0x1e1   : > { %1442 = vrot.lane.b32.xlu1 %v1547_v61, %s2396_s23 }
 0x1e2   : > { %1482 = vrot.lane.b32.xlu0 %v1587_v24, %s2398_s8  ;;  %v1654_v24 = vsel %vm884_vm2, %v2781_v53, %v2901_v7 }
 0x1e3   : > { %1444 = vrot.lane.b32.xlu2 %v1429_v23, %s2396_s23  ;;  %s2010_s23 = scalar_lea.sflag [#allocation4], %s269_s16 }
 0x1e4   : > { %2267 = vmatpush.bf16.msra.mxu3 %v2258_v49  ;;  %1868 = vmatpush.bf16.msra.mxu1 %v2258_v49 }
 0x1e5   : > { %v2913_v31 = vpop.permute.xlu2 %1476 }
 0x1e6   : > { %v1591_v32 = vpop.permute.xlu1 %1590 }
 0x1e7   : > { %v2919_v34 = vsel %vm1752_vm10, %v1737_v0, %v1591_v32 }
 0x1e8   : > { %2268 = vmatpush.bf16.msra.mxu3 %v2257_v54  ;;  %1869 = vmatpush.bf16.msra.mxu1 %v2257_v54 }
 0x1e9   : > { %1484 = vrot.lane.b32.xlu1 %v1469_v35, %s2398_s8  ;;  %2238 = vmatmul.msk.bf16.gmra.mxu2 %vm859_vm1, %v2228_v60  ;;  %s2091_s8 = sshll.u32 %s269_s16, 6 }
 0x1ea   : > { %1524 = vrot.lane.b32.xlu0 %v1509_v37, %s2403_s14  ;;  %s3052_s9 = scalar_lea.vmem [#allocation3], %s2091_s8  ;;  %s2347_s8 = scalar_lea.hbm %s3126_s7, 128 }
 0x1eb   : > { %1602 = vrot.lane.b32.xlu2 %v1469_v35, %s2401_s20  ;;  %s2022_s28 = sshll.u32 %s3052_s9, 4  ;;  %s2023_s28 = int_to_ptr.vmem [resolvable:$true] %s2022_s28 }
 0x1ec   : > { %v1515_v43 = vpop.permute.xlu0 %1514  ;;  %2269 = vmatpush.bf16.msra.mxu3 %v2256_v57  ;;  %1870 = vmatpush.bf16.msra.mxu1 %v2256_v57 }
 0x1ed   : > { %v1555_v15 = vpop.permute.xlu2 %1554 }
 0x1ee   : > { %v1397_v52 = vpop.permute.xlu1 %1396 }
 0x1ef   : > { %v1677_v8 = vsel %vm918_vm4, %v1657_v2, %v1397_v52 }
 0x1f1   : > { %1562 = vrot.lane.b32.xlu1 %v1429_v23, %s2400_s19 }
 0x1f2   : > { %1642 = vrot.lane.b32.xlu0 %v1509_v37, %s2402_s22  ;;  %v2262_v37 = vld [vmem:[%s2498_s17 + $0xfc] sm:$0xf0] }
 0x1f3   : > { %1592 = vrot.lane.b32.xlu2 %v2807_v17, %s2401_s20  ;;  %v2232_v41 = vor.u32 %v2262_v37, %v2231_v36 }
 0x1f4   : > { %v1553_v25 = vpop.permute.xlu0 %1552 }
 0x1f5   : > { %v2942_v45 = vsel %vm1735_vm12, %v1722_v20, %v1553_v25  ;;  %v1359_v17 = vpop.permute.xlu2 %1358 }
 0x1f6   : > { %v1475_v51 = vpop.permute.xlu1 %1474  ;;  %v1660_v44 = vsel %vm884_vm2, %v2818_v26, %v1359_v17 }
 0x1f9   : > { %1632 = vrot.lane.b32.xlu1 %v2805_v56, %s2402_s22  ;;  %v1675_v56 = vsel %vm918_vm4, %v1654_v24, %v2889_v55  ;;  %2239 = vmatmul.msk.bf16.gmra.mxu2 %vm859_vm1, %v2232_v41  ;;  %v2235_v24 = vld [vmem:[%s2498_s17 + $0x108] sm:$0xf] }
 0x1fa   : > { %1630 = vrot.lane.b32.xlu0 %v2779_v50, %s2402_s22  ;;  %v1691_v0 = vsel %vm952_vm6, %v1675_v56, %v2907_v11 }
 0x1fb   : > { %v1707_v50 = vsel %vm986_vm8, %v1691_v0, %v1475_v51 }
 0x1fc   : > { %v1437_v61 = vpop.permute.xlu0 %1436  ;;  %v1724_v9 = vsel %vm1718_vm11, %v1707_v50, %v1515_v43 }
 0x1fd   : > { %v1597_v62 = vpop.permute.xlu2 %1596  ;;  %v1693_v53 = vsel %vm952_vm6, %v1677_v8, %v1437_v61  ;;  %v1741_v11 = vsel %vm1735_vm12, %v1724_v9, %v1555_v15 }
 0x1fe   : > { %v1517_v16 = vpop.permute.xlu1 %1516  ;;  %v1709_v55 = vsel %vm986_vm8, %v1693_v53, %v2913_v31 }
 0x1ff   : > { %v1726_v39 = vsel %vm1718_vm11, %v1709_v55, %v1517_v16 }
 0x204   : > { %v1635_v5 = vpop.permute.xlu0 %1634 }
 0x205   : > { %v1401_v7 = vpop.permute.xlu2 %1400 }
 0x206   : > { %v1595_v63 = vpop.permute.xlu1 %1594 }
 0x207   : > { %v1758_v13 = vsel %vm1752_vm10, %v1741_v11, %v1595_v63  ;;  %v2263_v63 = vld [vmem:[%s2498_s17 + $0x10c] sm:$0xf0]  ;;  %s2341_s17 = sshra.s32 %s2025_s15, 4  ;;  %s2342_s17 = int_to_ptr.hbm [resolvable:$true] %s2341_s17 }
 0x208   : > { %v1775_v1 = vsel %vm1769_vm0, %v1758_v13, %v1635_v5  ;;  %v2236_v0 = vor.u32 %v2263_v63, %v2235_v24  ;;  %s2343_s19 = scalar_lea.hbm %s2342_s17, 64  ;;  %p2348_p0 = scmp.lt.s32.totalorder %s2342_s17, %s3126_s7 }
 0x209   : > { %v1809_v22 = vunpack.c.l.b16 %v1775_v1  ;;  %p2344_p11 = scmp.ne.s32.totalorder %s2342_s17, %s2343_s19  ;;  %p2349_p1 = scmp.lt.s32.totalorder %s2347_s8, %s2343_s19 }
 0x20a   : > { %2240 = vmatmul.msk.bf16.gmra.mxu2 %vm859_vm1, %v2236_v0 }
 0x20b   : > { %p2345_p12 = pnand %p2344_p11, %p2483_p5  ;;  %p2350_p2 = por %p2349_p1, %p2348_p0 }
 0x20d   : > { %v1479_v23 = vpop.permute.xlu2 %1478  ;;  %p2346_p13 = pneg %p2345_p12 }
 0x20e   : > { %v1399_v10 = vpop.permute.xlu1 %1398 }
 0x20f   : > { %v1679_v12 = vsel %vm918_vm4, %v1660_v44, %v1399_v10  ;;  %p2351_p3 = pnand %p2350_p2, %p2346_p13 }
 0x214   : > { %v1557_v18 = vpop.permute.xlu0 %1556 }
 0x215   : > { %v1743_v14 = vsel %vm1735_vm12, %v1726_v39, %v1557_v18  ;;  %v1521_v32 = vpop.permute.xlu2 %1520 }
 0x216   : > { %v1760_v19 = vsel %vm1752_vm10, %v1743_v14, %v1597_v62  ;;  %v1637_v20 = vpop.permute.xlu1 %1636 }
 0x217   : > { %v1777_v21 = vsel %vm1769_vm0, %v1760_v19, %v1637_v20 }
 0x218   : > { %v1810_v27 = vunpack.c.l.b16 %v1777_v21 }
 0x21a   : > { %v1816_v28 = vpack.c.b16 %v1810_v27, %v1809_v22 }
 0x21c   : > { %v1361_v31 = vpop.permute.xlu0 %1360  ;;  %2210 = vmatmul.msk.bf16.vlgmr.msra.gmra.mxu3 %vm1846_vm14, %v1816_v28 }
 0x21d   : > { %v1599_v38 = vpop.permute.xlu2 %1598  ;;  %v1663_v15 = vsel %vm884_vm2, %v2844_v58, %v1361_v31 }
 0x21e   : > { %v1519_v35 = vpop.permute.xlu1 %1518  ;;  %v1681_v54 = vsel %vm918_vm4, %v1663_v15, %v1401_v7 }
 0x224   : > { %v1439_v33 = vpop.permute.xlu0 %1438 }
 0x225   : > { %v1403_v46 = vpop.permute.xlu2 %1402  ;;  %v1695_v52 = vsel %vm952_vm6, %v1679_v12, %v1439_v33 }
 0x226   : > { %v1441_v42 = vpop.permute.xlu1 %1440  ;;  %v1711_v47 = vsel %vm986_vm8, %v1695_v52, %v1479_v23 }
 0x227   : > { %v1728_v51 = vsel %vm1718_vm11, %v1711_v47, %v1519_v35  ;;  %v1697_v57 = vsel %vm952_vm6, %v1681_v54, %v1441_v42 }
 0x22c   : > { %v1481_v40 = vpop.permute.xlu0 %1480 }
 0x22d   : > { %v1713_v4 = vsel %vm986_vm8, %v1697_v57, %v1481_v40  ;;  %v1641_v59 = vpop.permute.xlu2 %1640 }
 0x22e   : > { %v1639_v49 = vpop.permute.xlu1 %1638  ;;  %v1730_v60 = vsel %vm1718_vm11, %v1713_v4, %v1521_v32 }
 0x234   : > { %v1559_v43 = vpop.permute.xlu0 %1558 }
 0x235   : > { %v1745_v26 = vsel %vm1735_vm12, %v1728_v51, %v1559_v43  ;;  %v1523_v9 = vpop.permute.xlu2 %1522  ;;  %v3044_v51 = vld [vmem:[%s3123_s4] ss:$0 sm:$0xff] }
 0x236   : > { %v1762_v17 = vsel %vm1752_vm10, %v1745_v26, %v1599_v38 }
 0x237   : > { %v1779_v62 = vsel %vm1769_vm0, %v1762_v17, %v1639_v49 }
 0x238   : > { %v1811_v5 = vunpack.c.l.b16 %v1779_v62 }
 0x23c   : > { %v1363_v25 = vpop.permute.xlu0 %1362 }
 0x23d   : > { %v1445_v55 = vpop.permute.xlu2 %1444  ;;  %v1666_v18 = vsel %vm884_vm2, %v2854_v6, %v1363_v25 }
 0x23e   : > { %v1683_v19 = vsel %vm918_vm4, %v1666_v18, %v1403_v46 }
 0x243   : > { %v1561_v16 = vpop.permute.xlu1 %1560 }
 0x244   : > { %v1747_v58 = vsel %vm1735_vm12, %v1730_v60, %v1561_v16  ;;  %v1601_v61 = vpop.permute.xlu0 %1600 }
 0x245   : > { %v1764_v56 = vsel %vm1752_vm10, %v1747_v58, %v1601_v61  ;;  %v1603_v27 = vpop.permute.xlu2 %1602 }
 0x246   : > { %v1781_v50 = vsel %vm1769_vm0, %v1764_v56, %v1641_v59 }
 0x247   : > { %v1812_v2 = vunpack.c.l.b16 %v1781_v50 }
 0x249   : > { %v1817_v8 = vpack.c.b16 %v1812_v2, %v1811_v5 }
 0x24b   : > { %2211 = vmatmul.msk.bf16.gmra.mxu3 %vm1846_vm14, %v1817_v8  ;;  %v1365_v53 = vpop.permute.xlu1 %1364 }
 0x24c   : > { %v1405_v7 = vpop.permute.xlu0 %1404  ;;  %v1669_v13 = vsel %vm884_vm2, %v2886_v48, %v1365_v53 }
 0x24d   : > { %v1685_v39 = vsel %vm918_vm4, %v1669_v13, %v1405_v7  ;;  %v1593_v41 = vpop.permute.xlu2 %1592 }
 0x24e   : > { %v1701_v1 = vsel %vm952_vm6, %v1685_v39, %v1445_v55 }
 0x253   : > { %v1443_v10 = vpop.permute.xlu1 %1442 }
 0x254   : > { %v1483_v11 = vpop.permute.xlu0 %1482  ;;  %v1699_v22 = vsel %vm952_vm6, %v1683_v19, %v1443_v10 }
 0x255   : > { %v1715_v28 = vsel %vm986_vm8, %v1699_v22, %v1483_v11 }
 0x256   : > { %v1732_v31 = vsel %vm1718_vm11, %v1715_v28, %v1523_v9 }
 0x25b   : > { %v1485_v14 = vpop.permute.xlu1 %1484  ;;  %v1949_v15 = vpop.f32.mrf.mxu2 }
 0x25c   : > { %v1717_v20 = vsel %vm986_vm8, %v1701_v1, %v1485_v14  ;;  %v1525_v21 = vpop.permute.xlu0 %1524 }
 0x25d   : > { %v1734_v23 = vsel %vm1718_vm11, %v1717_v20, %v1525_v21 }
 0x25e   : > { %v1751_v48 = vsel %vm1735_vm12, %v1734_v23, %v2850_v3 }
 0x25f   : > { %v1768_v6 = vsel %vm1752_vm10, %v1751_v48, %v2866_v29  ;;  %v1756_v29 = vsel %vm1752_vm10, %v2942_v45, %v1593_v41  ;;  %v3039_v45 = vld [vmem:[%s3125_s6] ss:$0 sm:$0xff] }
 0x260   : > { %v1785_v36 = vsel %vm1769_vm0, %v1768_v6, %v2869_v30  ;;  %v1950_v20 = vadd.f32 %v3039_v45, %v1949_v15 }
 0x261   : > { %v1814_v3 = vunpack.c.l.b16 %v1785_v36 }
 0x263   : > { %v1563_v32 = vpop.permute.xlu1 %1562  ;;  %v3034_v49 = vpop.f32.mrf.mxu2 }
 0x264   : > { %v1749_v33 = vsel %vm1735_vm12, %v1732_v31, %v1563_v32  ;;  %v1643_v35 = vpop.permute.xlu0 %1642 }
 0x265   : > { %v1766_v37 = vsel %vm1752_vm10, %v1749_v33, %v1603_v27 }
 0x266   : > { %v1783_v38 = vsel %vm1769_vm0, %v1766_v37, %v1643_v35  ;;  %v1952_v37 = vadd.f32 %v3039_v45, %v3034_v49 }
 0x267   : > { %v1813_v40 = vunpack.c.l.b16 %v1783_v38 }
 0x269   : > { %v1818_v42 = vpack.c.b16 %v1814_v3, %v1813_v40 }
 0x26b   : > { %2212 = vmatmul.msk.bf16.gmra.mxu3 %vm1846_vm14, %v1818_v42  ;;  %v1633_v43 = vpop.permute.xlu1 %1632 }
 0x26c   : > { %v1773_v44 = vsel %vm1769_vm0, %v1756_v29, %v1633_v43  ;;  %v1631_v12 = vpop.permute.xlu0 %1630  ;;  %v1954_v25 = vpop.f32.mrf.mxu2 }
 0x26d   : > { %v1808_v30 = vunpack.c.l.b16 %v1773_v44  ;;  %v1771_v46 = vsel %vm1769_vm0, %v2919_v34, %v1631_v12  ;;  %v1955_v34 = vadd.f32 %v3039_v45, %v1954_v25 }
 0x26e   : > { %v1807_v52 = vunpack.c.l.b16 %v1771_v46 }
 0x270   : > { %v1815_v47 = vpack.c.b16 %v1808_v30, %v1807_v52 }
 0x272   : > { %2209 = vmatmul.msk.bf16.vlgmr.msra.gmra.mxu1 %vm1846_vm14, %v1815_v47 }
 0x274   : > { %v1956_v4 = vpop.f32.mrf.mxu2 }
 0x275   : > { %v1957_v60 = vadd.f32 %v3039_v45, %v1956_v4 }
 0x27c   : > { %v1959_v63 = vpop.f32.mrf.mxu2 }
 0x27d   : > { %v1960_v56 = vadd.f32 %v3039_v45, %v1959_v63 }
 0x284   : > { %v1961_v5 = vpop.f32.mrf.mxu2 }
 0x285   : > { %v1962_v53 = vadd.f32 %v3039_v45, %v1961_v5 }
 0x28d   : > { %v1964_v39 = vpop.f32.mrf.mxu2 }
 0x28e   : > { %v1965_v18 = vadd.f32 %v3039_v45, %v1964_v39 }
 0x295   : > { %v1966_v28 = vpop.f32.mrf.mxu2 }
 0x296   : > { %v1967_v33 = vadd.f32 %v3039_v45, %v1966_v28 }
 0x29f   : > { %v1877_v54 = vpop.f32.mrf.mxu3 }
 0x2a0   : > { %v1878_v26 = vadd.f32 %v3044_v51, %v1877_v54 }
 0x2a2   : > { %v1971_v57 = vadd.f32 %v1955_v34, %v1878_v26 }
 0x2a4   : > { %vm1979_vm1 = vcmp.ge.f32.partialorder %v1971_v57, 0.0  ;;  %v1987_v59 = vmul.f32 0.01, %v1971_v57 }
 0x2a6   : > { %v1995_v17 = vsel %vm1979_vm1, %v1971_v57, %v1987_v59 }
 0x2a7   : > { %2003 = vst.msk [vmem:[%s3052_s9 + $0x10] sm:$0xff] %vm884_vm2, %v1995_v17  ;;  %v1879_v16 = vpop.f32.mrf.mxu3 }
 0x2a8   : > { %v1880_v58 = vadd.f32 %v3044_v51, %v1879_v16 }
 0x2aa   : > { %v1972_v61 = vadd.f32 %v1957_v60, %v1880_v58 }
 0x2ac   : > { %vm1980_vm4 = vcmp.ge.f32.partialorder %v1972_v61, 0.0  ;;  %v1988_v62 = vmul.f32 0.01, %v1972_v61 }
 0x2ae   : > { %v1996_v24 = vsel %vm1980_vm4, %v1972_v61, %v1988_v62 }
 0x2af   : > { %2004 = vst.msk [vmem:[%s3052_s9 + $0x18] sm:$0xff] %vm884_vm2, %v1996_v24 }
 0x2ce   : > { %v1882_v0 = vpop.f32.mrf.mxu3 }
 0x2cf   : > { %v1883_v50 = vadd.f32 %v3044_v51, %v1882_v0 }
 0x2d1   : > { %v1973_v2 = vadd.f32 %v1960_v56, %v1883_v50 }
 0x2d3   : > { %vm1981_vm6 = vcmp.ge.f32.partialorder %v1973_v2, 0.0  ;;  %v1989_v8 = vmul.f32 0.01, %v1973_v2 }
 0x2d5   : > { %v1997_v9 = vsel %vm1981_vm6, %v1973_v2, %v1989_v8 }
 0x2d6   : > { %2005 = vst.msk [vmem:[%s3052_s9 + $0x20] sm:$0xff] %vm884_vm2, %v1997_v9  ;;  %v1884_v7 = vpop.f32.mrf.mxu3 }
 0x2d7   : > { %v1885_v10 = vadd.f32 %v3044_v51, %v1884_v7 }
 0x2d9   : > { %v1974_v55 = vadd.f32 %v1962_v53, %v1885_v10 }
 0x2db   : > { %vm1982_vm8 = vcmp.ge.f32.partialorder %v1974_v55, 0.0  ;;  %v1990_v11 = vmul.f32 0.01, %v1974_v55 }
 0x2dd   : > { %v1998_v13 = vsel %vm1982_vm8, %v1974_v55, %v1990_v11 }
 0x2de   : > { %2006 = vst.msk [vmem:[%s3052_s9 + $0x28] sm:$0xff] %vm884_vm2, %v1998_v13 }
 0x2ee   : > { %v1887_v1 = vpop.f32.mrf.mxu3 }
 0x2ef   : > { %v1888_v14 = vadd.f32 %v3044_v51, %v1887_v1  ;;  %v1872_v19 = vpop.f32.mrf.mxu1 }
 0x2f0   : > { %v1873_v21 = vadd.f32 %v3044_v51, %v1872_v19 }
 0x2f1   : > { %v1975_v22 = vadd.f32 %v1965_v18, %v1888_v14 }
 0x2f2   : > { %v1969_v23 = vadd.f32 %v1950_v20, %v1873_v21 }
 0x2f3   : > { %vm1983_vm15 = vcmp.ge.f32.partialorder %v1975_v22, 0.0  ;;  %v1991_v27 = vmul.f32 0.01, %v1975_v22 }
 0x2f4   : > { %vm1977_vm3 = vcmp.ge.f32.partialorder %v1969_v23, 0.0  ;;  %v1985_v48 = vmul.f32 0.01, %v1969_v23 }
 0x2f5   : > { %v1999_v6 = vsel %vm1983_vm15, %v1975_v22, %v1991_v27 }
 0x2f6   : > { %2007 = vst.msk [vmem:[%s3052_s9 + $0x30] sm:$0xff] %vm884_vm2, %v1999_v6  ;;  %v1993_v31 = vsel %vm1977_vm3, %v1969_v23, %v1985_v48  ;;  %v1889_v32 = vpop.f32.mrf.mxu3 }
 0x2f7   : > { %2001 = vst.msk [vmem:[%s3052_s9] sm:$0xff] %vm884_vm2, %v1993_v31  ;;  %v1890_v35 = vadd.f32 %v3044_v51, %v1889_v32  ;;  %v1874_v36 = vpop.f32.mrf.mxu1 }
 0x2f8   : > { %v1875_v38 = vadd.f32 %v3044_v51, %v1874_v36 }
 0x2f9   : > { %v1976_v40 = vadd.f32 %v1967_v33, %v1890_v35 }
 0x2fa   : > { %v1970_v3 = vadd.f32 %v1952_v37, %v1875_v38 }
 0x2fb   : > { %vm1984_vm5 = vcmp.ge.f32.partialorder %v1976_v40, 0.0  ;;  %v1992_v41 = vmul.f32 0.01, %v1976_v40 }
 0x2fc   : > { %vm1978_vm7 = vcmp.ge.f32.partialorder %v1970_v3, 0.0  ;;  %v1986_v42 = vmul.f32 0.01, %v1970_v3 }
 0x2fd   : > { %v2000_v29 = vsel %vm1984_vm5, %v1976_v40, %v1992_v41 }
 0x2fe   : > { %2008 = vst.msk [vmem:[%s3052_s9 + $0x38] sm:$0xff] %vm884_vm2, %v2000_v29  ;;  %v1994_v43 = vsel %vm1978_vm7, %v1970_v3, %v1986_v42 }
 0x2ff   : > { %2002 = vst.msk [vmem:[%s3052_s9 + $0x8] sm:$0xff] %vm884_vm2, %v1994_v43 }
 0x300   : > { %2354 = shalt.err (!%p2351_p3)
}
 0x301   : > { %s2404_s16 = smov 128  }
 0x302   : > { %2271 = dma.vmem_to_hbm [thread:$0]  (%p2483_p5), %s2023_s28, 1024, %s2025_s15, %s2010_s23, %s2404_s16, %s2404_s16, %s2394_s21  }
 0x303 PF: > { %p2277_p4 = scmp.ge.s32.totalorder %s2389_s27, 2  ;;  %s2039_s9 = sand.u32 1, %s2377_s24  }
 0x304   : > { %s2040_s14 = scalar_lea.sflag [#allocation4], %s2039_s9 }
 0x305   : > { %p2274_p7 = pnand %p2277_p4, %p2487_p6 }
 0x307   : > { %p2275_p8 = pneg %p2274_p7 }
 0x309   : > { %2372 = dma.done.wait (%p2275_p8), %s2040_s14, 1024  }
 0x30a   : > { %2374 = vsyncadd (%p2275_p8), %s2040_s14, 4294966272  ;;  %p17_p9 = scmp.ge.s32.totalorder %s2470_s30, 4   ;;  %s3129_s24 = smov %s2381_s25 }
 0x30b   : > { %s3130_s25 = smov %s2385_s26  ;;  %s3131_s26 = smov %s2481_s10 }
 0x30c   : > { %s3132_s27 = smov %s2470_s30  ;;  %19 = sbr.rel (!%p17_p9) target bundleno = 3 (0x3), region = 91 }
 0x311   :  { %2046 = vsyncpa [#allocation4], 1 }
 0x312   :  { %2048 = vsyncpa [#allocation4 + $0x1], 1 }

</bundles_post_ra>
